<compile_context>
chip_gen: v7x
topology: tpu7x:2x2x1
jax: 0.10.0
libtpu: 0.0.40
codegen_flags: <defaults>
</compile_context>

<pallas_src>
import functools

import numpy as np
import jax
import jax.numpy as jnp
from jax.experimental import pallas as pl
from jax.experimental.pallas import tpu as pltpu

KERNEL = (3, 3)
HIDDEN = (64, 64, 128, 128)
STRIDE = (2, 2, 2, 1)
BN_EPS = 1e-5


def _conv_out(n, k, s, p):
    return (n + 2 * p - k) // s + 1


# ---------------------------------------------------------------------------
# Fused Pallas kernel: conv -> BN(train stats) -> ReLU, four layers, VMEM resident
# ---------------------------------------------------------------------------
def _bn_relu(z, gamma, beta):
    # BatchNorm2d training mode: biased variance over all (batch*spatial) rows, then ReLU.
    mean = jnp.mean(z, axis=0, keepdims=True)
    var = jnp.mean((z - mean) ** 2, axis=0, keepdims=True)
    scale = gamma * jax.lax.rsqrt(var + BN_EPS)
    shift = beta - mean * scale
    return jnp.maximum(z * scale + shift, 0.0)


def fused_encoder_kernel(p1_ref, w1_ref, g1_ref, b1_ref,
                         s2_ref, w2_ref, g2_ref, b2_ref,
                         s3_ref, w3_ref, g3_ref, b3_ref,
                         s4_ref, w4_ref, g4_ref, b4_ref,
                         o_ref, *, m_out, c_in):
    # ---- layer 1: im2col patches (M1, 9) @ W1 (9, C1) on the MXU -------------------
    z = jnp.dot(p1_ref[...], w1_ref[...], preferred_element_type=jnp.float32)
    y = _bn_relu(z, g1_ref[...], b1_ref[...])

    # ---- layers 2..4: in-VMEM im2col via tap-selection matmuls ---------------------
    layers = ((s2_ref, w2_ref, g2_ref, b2_ref, m_out[1], c_in[1]),
              (s3_ref, w3_ref, g3_ref, b3_ref, m_out[2], c_in[2]),
              (s4_ref, w4_ref, g4_ref, b4_ref, m_out[3], c_in[3]))
    for s_ref, w_ref, g_ref, b_ref, m, c in layers:
        # v[t*m + r, :] = previous-layer row feeding tap t of output row r (0 if padding)
        v = jnp.dot(s_ref[...], y, preferred_element_type=jnp.float32)   # (9*m, c_in)
        w = w_ref[...]                                                   # (9*c_in, c_out)
        z = jnp.dot(v[0:m, :], w[0:c, :], preferred_element_type=jnp.float32)
        for t in range(1, 9):                                            # fully unrolled taps
            z = z + jnp.dot(v[t * m:(t + 1) * m, :], w[t * c:(t + 1) * c, :],
                            preferred_element_type=jnp.float32)
        y = _bn_relu(z, g_ref[...], b_ref[...])

    o_ref[...] = y


# ---------------------------------------------------------------------------
# Host-side helpers (static-shape glue only)
# ---------------------------------------------------------------------------
def _tap_select_matrix(b, h_in, w_in, stride, kh, kw, ph, pw):
    """0/1 matrix S of shape (KH*KW*M_out, M_in).  (S @ Y)[t*M_out + r] is the input row
    feeding tap t of output row r, or an all-zero row where the tap hits zero padding."""
    ho = _conv_out(h_in, kh, stride, ph)
    wo = _conv_out(w_in, kw, stride, pw)
    m_out, m_in = b * ho * wo, b * h_in * w_in
    sel = np.zeros((kh * kw * m_out, m_in), np.float32)
    for bi in range(b):
        for oh in range(ho):
            for ow in range(wo):
                r = (bi * ho + oh) * wo + ow
                for ki in range(kh):
                    for kj in range(kw):
                        hi = oh * stride + ki - ph
                        wi = ow * stride + kj - pw
                        if 0 <= hi < h_in and 0 <= wi < w_in:
                            t = ki * kw + kj
                            sel[t * m_out + r, (bi * h_in + hi) * w_in + wi] = 1.0
    return sel, ho, wo


def _im2col_layer1(x_nhwc, kh, kw, stride, ph, pw):
    """Layer-1 patches (C_in == 1): depends only on the kernel input, so built host-side."""
    B, H, W, C = x_nhwc.shape
    xp = jnp.pad(x_nhwc, ((0, 0), (ph, ph), (pw, pw), (0, 0)))
    Ho = _conv_out(H, kh, stride, ph)
    Wo = _conv_out(W, kw, stride, pw)
    cols = [xp[:, ki:ki + stride * Ho:stride, kj:kj + stride * Wo:stride, :]
            for ki in range(kh) for kj in range(kw)]
    p = jnp.stack(cols, axis=3)                       # (B, Ho, Wo, 9, 1)
    return p.reshape(B * Ho * Wo, kh * kw * C), Ho, Wo


def init_params(key, hidden=HIDDEN, kernel=KERNEL):
    """Deterministic synthetic parameters matching the PyTorch module's shapes."""
    filters = (1,) + tuple(hidden)
    params = []
    for i in range(len(hidden)):
        key, k1, k2, k3, k4 = jax.random.split(key, 5)
        c_in, c_out = filters[i], filters[i + 1]
        fan_in = c_in * kernel[0] * kernel[1]
        w = jax.random.normal(
            k1, (c_out, c_in, kernel[0], kernel[1]), jnp.float32
        ) * (1.0 / jnp.sqrt(fan_in))
        b = 0.01 * jax.random.normal(k2, (c_out,), jnp.float32)
        gamma = 1.0 + 0.1 * jax.random.normal(k3, (c_out,), jnp.float32)
        beta = 0.1 * jax.random.normal(k4, (c_out,), jnp.float32)
        params.append((w, b, gamma, beta))
    return params


# ---------------------------------------------------------------------------
# Full forward: one fused pallas_call
# ---------------------------------------------------------------------------
@functools.partial(jax.jit, static_argnums=(2,))
def cnn_encoder_forward(x_nchw, params, strides=STRIDE):
    assert len(params) == 4, "fused kernel is specialized for the 4-layer CNNEncoder"
    kh, kw = KERNEL
    ph, pw = kh // 2, kw // 2
    B = x_nchw.shape[0]
    x_nhwc = jnp.transpose(x_nchw, (0, 2, 3, 1))      # NCHW -> NHWC (channels lane-dense)

    patches1, h_cur, w_cur = _im2col_layer1(x_nhwc, kh, kw, strides[0], ph, pw)

    args, m_out, c_in = [], [], []
    for li, ((wgt, _bias, gamma, beta), s) in enumerate(zip(params, strides)):
        co, ci = wgt.shape[0], wgt.shape[1]
        # PyTorch (C_out, C_in, KH, KW) -> (KH*KW*C_in, C_out), tap-major rows.
        w_mat = jnp.transpose(wgt, (2, 3, 1, 0)).reshape(kh * kw * ci, co)
        c_in.append(ci)
        if li == 0:
            m_out.append(B * h_cur * w_cur)
            args += [patches1, w_mat, gamma.reshape(1, co), beta.reshape(1, co)]
        else:
            sel, ho, wo = _tap_select_matrix(B, h_cur, w_cur, s, kh, kw, ph, pw)
            m_out.append(B * ho * wo)
            args += [jnp.asarray(sel), w_mat, gamma.reshape(1, co), beta.reshape(1, co)]
            h_cur, w_cur = ho, wo
        # NOTE: conv bias (_bias) intentionally unused: BatchNorm (training mode) cancels it.

    c_last = params[-1][0].shape[0]
    m_last = m_out[-1]

    kernel = functools.partial(fused_encoder_kernel,
                               m_out=tuple(m_out), c_in=tuple(c_in))

    in_specs = [pl.BlockSpec(a.shape, lambda i: (0, 0)) for a in args]
    out_specs = pl.BlockSpec((m_last, c_last), lambda i: (0, 0))

    y = pl.pallas_call(
        kernel,
        out_shape=jax.ShapeDtypeStruct((m_last, c_last), jnp.float32),
        grid_spec=pltpu.PrefetchScalarGridSpec(
            num_scalar_prefetch=0,
            grid=(1,),
            in_specs=in_specs,
            out_specs=out_specs,
        ),
        compiler_params=pltpu.CompilerParams(
            dimension_semantics=("arbitrary",),
            vmem_limit_bytes=32 * 1024 * 1024,
        ),
    )(*args)

    y = y.reshape(B, h_cur, w_cur, c_last)            # rows are (b, h, w) ordered
    return jnp.transpose(y, (0, 3, 1, 2))             # NHWC -> NCHW


# ---------------------------------------------------------------------------
# Pure-JAX reference (lax conv, WITH bias) with identical semantics, for validation
# ---------------------------------------------------------------------------
def reference_forward(x_nchw, params, strides=STRIDE):
    kh, kw = KERNEL
    ph, pw = kh // 2, kw // 2
    x = x_nchw
    for (w, b, gamma, beta), s in zip(params, strides):
        y = jax.lax.conv_general_dilated(
            x, w, window_strides=(s, s),
            padding=[(ph, ph), (pw, pw)],
            dimension_numbers=("NCHW", "OIHW", "NCHW"),
        ) + b[None, :, None, None]
        mean = jnp.mean(y, axis=(0, 2, 3), keepdims=True)
        var = jnp.mean((y - mean) ** 2, axis=(0, 2, 3), keepdims=True)
        y = (y - mean) / jnp.sqrt(var + BN_EPS)
        y = y * gamma[None, :, None, None] + beta[None, :, None, None]
        x = jnp.maximum(y, 0.0)
    return x


if __name__ == "__main__":
    key = jax.random.PRNGKey(0)
    kp, kx = jax.random.split(key)
    params = init_params(kp)
    # Small input consistent with the module: NCHW, 1 input channel.
    x = jax.random.normal(kx, (2, 1, 16, 16), jnp.float32)

    out = cnn_encoder_forward(x, params, STRIDE)
    out = jax.block_until_ready(out)

    ref = jax.block_until_ready(reference_forward(x, params, STRIDE))
    assert out.shape == (2, 128, 2, 2), out.shape
    assert bool(jnp.all(jnp.isfinite(out)))
    assert jnp.allclose(out, ref, atol=1e-2, rtol=1e-2)

    print("KERNEL_OK")
</pallas_src>

<mosaic_0001>
module attributes {stable_mosaic.version = 11 : i64} {
  func.func @fused_encoder_kernel(%arg0: i32, %arg1: memref<128x9xf32, #tpu.memory_space<vmem>>, %arg2: memref<9x64xf32, #tpu.memory_space<vmem>>, %arg3: memref<1x64xf32, #tpu.memory_space<vmem>>, %arg4: memref<1x64xf32, #tpu.memory_space<vmem>>, %arg5: memref<288x128xf32, #tpu.memory_space<vmem>>, %arg6: memref<576x64xf32, #tpu.memory_space<vmem>>, %arg7: memref<1x64xf32, #tpu.memory_space<vmem>>, %arg8: memref<1x64xf32, #tpu.memory_space<vmem>>, %arg9: memref<72x32xf32, #tpu.memory_space<vmem>>, %arg10: memref<576x128xf32, #tpu.memory_space<vmem>>, %arg11: memref<1x128xf32, #tpu.memory_space<vmem>>, %arg12: memref<1x128xf32, #tpu.memory_space<vmem>>, %arg13: memref<72x8xf32, #tpu.memory_space<vmem>>, %arg14: memref<1152x128xf32, #tpu.memory_space<vmem>>, %arg15: memref<1x128xf32, #tpu.memory_space<vmem>>, %arg16: memref<1x128xf32, #tpu.memory_space<vmem>>, %arg17: memref<8x128xf32, #tpu.memory_space<vmem>>) attributes {dimension_semantics = [#tpu.dimension_semantics<arbitrary>], iteration_bounds = array<i64: 1>, scalar_prefetch = 0 : i64, scratch_operands = 0 : i64, tpu.core_type = #tpu.core_type<tc>, window_params = [{pipeline_mode = #tpu.pipeline_mode<synchronous>, transform_indices = @transform_0, window_bounds = array<i64: 128, 9>}, {pipeline_mode = #tpu.pipeline_mode<synchronous>, transform_indices = @transform_1, window_bounds = array<i64: 9, 64>}, {pipeline_mode = #tpu.pipeline_mode<synchronous>, transform_indices = @transform_2, window_bounds = array<i64: 1, 64>}, {pipeline_mode = #tpu.pipeline_mode<synchronous>, transform_indices = @transform_3, window_bounds = array<i64: 1, 64>}, {pipeline_mode = #tpu.pipeline_mode<synchronous>, transform_indices = @transform_4, window_bounds = array<i64: 288, 128>}, {pipeline_mode = #tpu.pipeline_mode<synchronous>, transform_indices = @transform_5, window_bounds = array<i64: 576, 64>}, {pipeline_mode = #tpu.pipeline_mode<synchronous>, transform_indices = @transform_6, window_bounds = array<i64: 1, 64>}, {pipeline_mode = #tpu.pipeline_mode<synchronous>, transform_indices = @transform_7, window_bounds = array<i64: 1, 64>}, {pipeline_mode = #tpu.pipeline_mode<synchronous>, transform_indices = @transform_8, window_bounds = array<i64: 72, 32>}, {pipeline_mode = #tpu.pipeline_mode<synchronous>, transform_indices = @transform_9, window_bounds = array<i64: 576, 128>}, {pipeline_mode = #tpu.pipeline_mode<synchronous>, transform_indices = @transform_10, window_bounds = array<i64: 1, 128>}, {pipeline_mode = #tpu.pipeline_mode<synchronous>, transform_indices = @transform_11, window_bounds = array<i64: 1, 128>}, {pipeline_mode = #tpu.pipeline_mode<synchronous>, transform_indices = @transform_12, window_bounds = array<i64: 72, 8>}, {pipeline_mode = #tpu.pipeline_mode<synchronous>, transform_indices = @transform_13, window_bounds = array<i64: 1152, 128>}, {pipeline_mode = #tpu.pipeline_mode<synchronous>, transform_indices = @transform_14, window_bounds = array<i64: 1, 128>}, {pipeline_mode = #tpu.pipeline_mode<synchronous>, transform_indices = @transform_15, window_bounds = array<i64: 1, 128>}, {pipeline_mode = #tpu.pipeline_mode<synchronous>, transform_indices = @transform_16, window_bounds = array<i64: 8, 128>}]} {
    %c0 = arith.constant 0 : index
    %c0_0 = arith.constant 0 : index
    %0 = vector.load %arg1[%c0, %c0_0] : memref<128x9xf32, #tpu.memory_space<vmem>>, vector<128x9xf32>
    %c0_1 = arith.constant 0 : index
    %c0_2 = arith.constant 0 : index
    %1 = vector.load %arg2[%c0_1, %c0_2] : memref<9x64xf32, #tpu.memory_space<vmem>>, vector<9x64xf32>
    %cst = arith.constant dense<0.000000e+00> : vector<128x64xf32>
    %2 = tpu.matmul %0, %1, %cst {dimension_numbers = #tpu.dot_dimension_numbers<[1], [0], [0], [1], [0, 0, 1, 1], [], []>} : vector<128x9xf32>, vector<9x64xf32>, vector<128x64xf32> -> vector<128x64xf32>
    %c0_3 = arith.constant 0 : index
    %c0_4 = arith.constant 0 : index
    %3 = vector.load %arg3[%c0_3, %c0_4] : memref<1x64xf32, #tpu.memory_space<vmem>>, vector<1x64xf32>
    %c0_5 = arith.constant 0 : index
    %c0_6 = arith.constant 0 : index
    %4 = vector.load %arg4[%c0_5, %c0_6] : memref<1x64xf32, #tpu.memory_space<vmem>>, vector<1x64xf32>
    %cst_7 = arith.constant dense<0.000000e+00> : vector<64xf32>
    %5 = vector.multi_reduction <add>, %2, %cst_7 [0] : vector<128x64xf32> to vector<64xf32>
    %6 = vector.shape_cast %5 : vector<64xf32> to vector<1x64xf32>
    %cst_8 = arith.constant 1.280000e+02 : f32
    %7 = vector.broadcast %cst_8 : f32 to vector<1x64xf32>
    %8 = arith.divf %6, %7 : vector<1x64xf32>
    %9 = vector.broadcast %8 : vector<1x64xf32> to vector<128x64xf32>
    %10 = arith.subf %2, %9 : vector<128x64xf32>
    %11 = arith.mulf %10, %10 : vector<128x64xf32>
    %cst_9 = arith.constant dense<0.000000e+00> : vector<64xf32>
    %12 = vector.multi_reduction <add>, %11, %cst_9 [0] : vector<128x64xf32> to vector<64xf32>
    %13 = vector.shape_cast %12 : vector<64xf32> to vector<1x64xf32>
    %cst_10 = arith.constant 1.280000e+02 : f32
    %14 = vector.broadcast %cst_10 : f32 to vector<1x64xf32>
    %15 = arith.divf %13, %14 : vector<1x64xf32>
    %cst_11 = arith.constant 9.99999974E-6 : f32
    %16 = vector.broadcast %cst_11 : f32 to vector<1x64xf32>
    %17 = arith.addf %15, %16 : vector<1x64xf32>
    %18 = math.rsqrt %17 : vector<1x64xf32>
    %19 = arith.mulf %3, %18 : vector<1x64xf32>
    %20 = arith.mulf %8, %19 : vector<1x64xf32>
    %21 = arith.subf %4, %20 : vector<1x64xf32>
    %22 = vector.broadcast %19 : vector<1x64xf32> to vector<128x64xf32>
    %23 = arith.mulf %2, %22 : vector<128x64xf32>
    %24 = vector.broadcast %21 : vector<1x64xf32> to vector<128x64xf32>
    %25 = arith.addf %23, %24 : vector<128x64xf32>
    %cst_12 = arith.constant 0.000000e+00 : f32
    %26 = vector.broadcast %cst_12 : f32 to vector<128x64xf32>
    %27 = arith.maximumf %25, %26 : vector<128x64xf32>
    %c0_13 = arith.constant 0 : index
    %c0_14 = arith.constant 0 : index
    %28 = vector.load %arg5[%c0_13, %c0_14] : memref<288x128xf32, #tpu.memory_space<vmem>>, vector<288x128xf32>
    %cst_15 = arith.constant dense<0.000000e+00> : vector<288x64xf32>
    %29 = tpu.matmul %28, %27, %cst_15 {dimension_numbers = #tpu.dot_dimension_numbers<[1], [0], [0], [1], [0, 0, 1, 1], [], []>} : vector<288x128xf32>, vector<128x64xf32>, vector<288x64xf32> -> vector<288x64xf32>
    %c0_16 = arith.constant 0 : index
    %c0_17 = arith.constant 0 : index
    %30 = vector.load %arg6[%c0_16, %c0_17] : memref<576x64xf32, #tpu.memory_space<vmem>>, vector<576x64xf32>
    %31 = vector.extract_strided_slice %29 {offsets = [0, 0], sizes = [32, 64], strides = [1, 1]} : vector<288x64xf32> to vector<32x64xf32>
    %32 = vector.extract_strided_slice %30 {offsets = [0, 0], sizes = [64, 64], strides = [1, 1]} : vector<576x64xf32> to vector<64x64xf32>
    %cst_18 = arith.constant dense<0.000000e+00> : vector<32x64xf32>
    %33 = tpu.matmul %31, %32, %cst_18 {dimension_numbers = #tpu.dot_dimension_numbers<[1], [0], [0], [1], [0, 0, 1, 1], [], []>} : vector<32x64xf32>, vector<64x64xf32>, vector<32x64xf32> -> vector<32x64xf32>
    %34 = vector.extract_strided_slice %29 {offsets = [32, 0], sizes = [32, 64], strides = [1, 1]} : vector<288x64xf32> to vector<32x64xf32>
    %35 = vector.extract_strided_slice %30 {offsets = [64, 0], sizes = [64, 64], strides = [1, 1]} : vector<576x64xf32> to vector<64x64xf32>
    %cst_19 = arith.constant dense<0.000000e+00> : vector<32x64xf32>
    %36 = tpu.matmul %34, %35, %cst_19 {dimension_numbers = #tpu.dot_dimension_numbers<[1], [0], [0], [1], [0, 0, 1, 1], [], []>} : vector<32x64xf32>, vector<64x64xf32>, vector<32x64xf32> -> vector<32x64xf32>
    %37 = arith.addf %33, %36 : vector<32x64xf32>
    %38 = vector.extract_strided_slice %29 {offsets = [64, 0], sizes = [32, 64], strides = [1, 1]} : vector<288x64xf32> to vector<32x64xf32>
    %39 = vector.extract_strided_slice %30 {offsets = [128, 0], sizes = [64, 64], strides = [1, 1]} : vector<576x64xf32> to vector<64x64xf32>
    %cst_20 = arith.constant dense<0.000000e+00> : vector<32x64xf32>
    %40 = tpu.matmul %38, %39, %cst_20 {dimension_numbers = #tpu.dot_dimension_numbers<[1], [0], [0], [1], [0, 0, 1, 1], [], []>} : vector<32x64xf32>, vector<64x64xf32>, vector<32x64xf32> -> vector<32x64xf32>
    %41 = arith.addf %37, %40 : vector<32x64xf32>
    %42 = vector.extract_strided_slice %29 {offsets = [96, 0], sizes = [32, 64], strides = [1, 1]} : vector<288x64xf32> to vector<32x64xf32>
    %43 = vector.extract_strided_slice %30 {offsets = [192, 0], sizes = [64, 64], strides = [1, 1]} : vector<576x64xf32> to vector<64x64xf32>
    %cst_21 = arith.constant dense<0.000000e+00> : vector<32x64xf32>
    %44 = tpu.matmul %42, %43, %cst_21 {dimension_numbers = #tpu.dot_dimension_numbers<[1], [0], [0], [1], [0, 0, 1, 1], [], []>} : vector<32x64xf32>, vector<64x64xf32>, vector<32x64xf32> -> vector<32x64xf32>
    %45 = arith.addf %41, %44 : vector<32x64xf32>
    %46 = vector.extract_strided_slice %29 {offsets = [128, 0], sizes = [32, 64], strides = [1, 1]} : vector<288x64xf32> to vector<32x64xf32>
    %47 = vector.extract_strided_slice %30 {offsets = [256, 0], sizes = [64, 64], strides = [1, 1]} : vector<576x64xf32> to vector<64x64xf32>
    %cst_22 = arith.constant dense<0.000000e+00> : vector<32x64xf32>
    %48 = tpu.matmul %46, %47, %cst_22 {dimension_numbers = #tpu.dot_dimension_numbers<[1], [0], [0], [1], [0, 0, 1, 1], [], []>} : vector<32x64xf32>, vector<64x64xf32>, vector<32x64xf32> -> vector<32x64xf32>
    %49 = arith.addf %45, %48 : vector<32x64xf32>
    %50 = vector.extract_strided_slice %29 {offsets = [160, 0], sizes = [32, 64], strides = [1, 1]} : vector<288x64xf32> to vector<32x64xf32>
    %51 = vector.extract_strided_slice %30 {offsets = [320, 0], sizes = [64, 64], strides = [1, 1]} : vector<576x64xf32> to vector<64x64xf32>
    %cst_23 = arith.constant dense<0.000000e+00> : vector<32x64xf32>
    %52 = tpu.matmul %50, %51, %cst_23 {dimension_numbers = #tpu.dot_dimension_numbers<[1], [0], [0], [1], [0, 0, 1, 1], [], []>} : vector<32x64xf32>, vector<64x64xf32>, vector<32x64xf32> -> vector<32x64xf32>
    %53 = arith.addf %49, %52 : vector<32x64xf32>
    %54 = vector.extract_strided_slice %29 {offsets = [192, 0], sizes = [32, 64], strides = [1, 1]} : vector<288x64xf32> to vector<32x64xf32>
    %55 = vector.extract_strided_slice %30 {offsets = [384, 0], sizes = [64, 64], strides = [1, 1]} : vector<576x64xf32> to vector<64x64xf32>
    %cst_24 = arith.constant dense<0.000000e+00> : vector<32x64xf32>
    %56 = tpu.matmul %54, %55, %cst_24 {dimension_numbers = #tpu.dot_dimension_numbers<[1], [0], [0], [1], [0, 0, 1, 1], [], []>} : vector<32x64xf32>, vector<64x64xf32>, vector<32x64xf32> -> vector<32x64xf32>
    %57 = arith.addf %53, %56 : vector<32x64xf32>
    %58 = vector.extract_strided_slice %29 {offsets = [224, 0], sizes = [32, 64], strides = [1, 1]} : vector<288x64xf32> to vector<32x64xf32>
    %59 = vector.extract_strided_slice %30 {offsets = [448, 0], sizes = [64, 64], strides = [1, 1]} : vector<576x64xf32> to vector<64x64xf32>
    %cst_25 = arith.constant dense<0.000000e+00> : vector<32x64xf32>
    %60 = tpu.matmul %58, %59, %cst_25 {dimension_numbers = #tpu.dot_dimension_numbers<[1], [0], [0], [1], [0, 0, 1, 1], [], []>} : vector<32x64xf32>, vector<64x64xf32>, vector<32x64xf32> -> vector<32x64xf32>
    %61 = arith.addf %57, %60 : vector<32x64xf32>
    %62 = vector.extract_strided_slice %29 {offsets = [256, 0], sizes = [32, 64], strides = [1, 1]} : vector<288x64xf32> to vector<32x64xf32>
    %63 = vector.extract_strided_slice %30 {offsets = [512, 0], sizes = [64, 64], strides = [1, 1]} : vector<576x64xf32> to vector<64x64xf32>
    %cst_26 = arith.constant dense<0.000000e+00> : vector<32x64xf32>
    %64 = tpu.matmul %62, %63, %cst_26 {dimension_numbers = #tpu.dot_dimension_numbers<[1], [0], [0], [1], [0, 0, 1, 1], [], []>} : vector<32x64xf32>, vector<64x64xf32>, vector<32x64xf32> -> vector<32x64xf32>
    %65 = arith.addf %61, %64 : vector<32x64xf32>
    %c0_27 = arith.constant 0 : index
    %c0_28 = arith.constant 0 : index
    %66 = vector.load %arg7[%c0_27, %c0_28] : memref<1x64xf32, #tpu.memory_space<vmem>>, vector<1x64xf32>
    %c0_29 = arith.constant 0 : index
    %c0_30 = arith.constant 0 : index
    %67 = vector.load %arg8[%c0_29, %c0_30] : memref<1x64xf32, #tpu.memory_space<vmem>>, vector<1x64xf32>
    %cst_31 = arith.constant dense<0.000000e+00> : vector<64xf32>
    %68 = vector.multi_reduction <add>, %65, %cst_31 [0] : vector<32x64xf32> to vector<64xf32>
    %69 = vector.shape_cast %68 : vector<64xf32> to vector<1x64xf32>
    %cst_32 = arith.constant 3.200000e+01 : f32
    %70 = vector.broadcast %cst_32 : f32 to vector<1x64xf32>
    %71 = arith.divf %69, %70 : vector<1x64xf32>
    %72 = vector.broadcast %71 : vector<1x64xf32> to vector<32x64xf32>
    %73 = arith.subf %65, %72 : vector<32x64xf32>
    %74 = arith.mulf %73, %73 : vector<32x64xf32>
    %cst_33 = arith.constant dense<0.000000e+00> : vector<64xf32>
    %75 = vector.multi_reduction <add>, %74, %cst_33 [0] : vector<32x64xf32> to vector<64xf32>
    %76 = vector.shape_cast %75 : vector<64xf32> to vector<1x64xf32>
    %cst_34 = arith.constant 3.200000e+01 : f32
    %77 = vector.broadcast %cst_34 : f32 to vector<1x64xf32>
    %78 = arith.divf %76, %77 : vector<1x64xf32>
    %cst_35 = arith.constant 9.99999974E-6 : f32
    %79 = vector.broadcast %cst_35 : f32 to vector<1x64xf32>
    %80 = arith.addf %78, %79 : vector<1x64xf32>
    %81 = math.rsqrt %80 : vector<1x64xf32>
    %82 = arith.mulf %66, %81 : vector<1x64xf32>
    %83 = arith.mulf %71, %82 : vector<1x64xf32>
    %84 = arith.subf %67, %83 : vector<1x64xf32>
    %85 = vector.broadcast %82 : vector<1x64xf32> to vector<32x64xf32>
    %86 = arith.mulf %65, %85 : vector<32x64xf32>
    %87 = vector.broadcast %84 : vector<1x64xf32> to vector<32x64xf32>
    %88 = arith.addf %86, %87 : vector<32x64xf32>
    %cst_36 = arith.constant 0.000000e+00 : f32
    %89 = vector.broadcast %cst_36 : f32 to vector<32x64xf32>
    %90 = arith.maximumf %88, %89 : vector<32x64xf32>
    %c0_37 = arith.constant 0 : index
    %c0_38 = arith.constant 0 : index
    %91 = vector.load %arg9[%c0_37, %c0_38] : memref<72x32xf32, #tpu.memory_space<vmem>>, vector<72x32xf32>
    %cst_39 = arith.constant dense<0.000000e+00> : vector<72x64xf32>
    %92 = tpu.matmul %91, %90, %cst_39 {dimension_numbers = #tpu.dot_dimension_numbers<[1], [0], [0], [1], [0, 0, 1, 1], [], []>} : vector<72x32xf32>, vector<32x64xf32>, vector<72x64xf32> -> vector<72x64xf32>
    %c0_40 = arith.constant 0 : index
    %c0_41 = arith.constant 0 : index
    %93 = vector.load %arg10[%c0_40, %c0_41] : memref<576x128xf32, #tpu.memory_space<vmem>>, vector<576x128xf32>
    %94 = vector.extract_strided_slice %92 {offsets = [0, 0], sizes = [8, 64], strides = [1, 1]} : vector<72x64xf32> to vector<8x64xf32>
    %95 = vector.extract_strided_slice %93 {offsets = [0, 0], sizes = [64, 128], strides = [1, 1]} : vector<576x128xf32> to vector<64x128xf32>
    %cst_42 = arith.constant dense<0.000000e+00> : vector<8x128xf32>
    %96 = tpu.matmul %94, %95, %cst_42 {dimension_numbers = #tpu.dot_dimension_numbers<[1], [0], [0], [1], [0, 0, 1, 1], [], []>} : vector<8x64xf32>, vector<64x128xf32>, vector<8x128xf32> -> vector<8x128xf32>
    %97 = vector.extract_strided_slice %92 {offsets = [8, 0], sizes = [8, 64], strides = [1, 1]} : vector<72x64xf32> to vector<8x64xf32>
    %98 = vector.extract_strided_slice %93 {offsets = [64, 0], sizes = [64, 128], strides = [1, 1]} : vector<576x128xf32> to vector<64x128xf32>
    %cst_43 = arith.constant dense<0.000000e+00> : vector<8x128xf32>
    %99 = tpu.matmul %97, %98, %cst_43 {dimension_numbers = #tpu.dot_dimension_numbers<[1], [0], [0], [1], [0, 0, 1, 1], [], []>} : vector<8x64xf32>, vector<64x128xf32>, vector<8x128xf32> -> vector<8x128xf32>
    %100 = arith.addf %96, %99 : vector<8x128xf32>
    %101 = vector.extract_strided_slice %92 {offsets = [16, 0], sizes = [8, 64], strides = [1, 1]} : vector<72x64xf32> to vector<8x64xf32>
    %102 = vector.extract_strided_slice %93 {offsets = [128, 0], sizes = [64, 128], strides = [1, 1]} : vector<576x128xf32> to vector<64x128xf32>
    %cst_44 = arith.constant dense<0.000000e+00> : vector<8x128xf32>
    %103 = tpu.matmul %101, %102, %cst_44 {dimension_numbers = #tpu.dot_dimension_numbers<[1], [0], [0], [1], [0, 0, 1, 1], [], []>} : vector<8x64xf32>, vector<64x128xf32>, vector<8x128xf32> -> vector<8x128xf32>
    %104 = arith.addf %100, %103 : vector<8x128xf32>
    %105 = vector.extract_strided_slice %92 {offsets = [24, 0], sizes = [8, 64], strides = [1, 1]} : vector<72x64xf32> to vector<8x64xf32>
    %106 = vector.extract_strided_slice %93 {offsets = [192, 0], sizes = [64, 128], strides = [1, 1]} : vector<576x128xf32> to vector<64x128xf32>
    %cst_45 = arith.constant dense<0.000000e+00> : vector<8x128xf32>
    %107 = tpu.matmul %105, %106, %cst_45 {dimension_numbers = #tpu.dot_dimension_numbers<[1], [0], [0], [1], [0, 0, 1, 1], [], []>} : vector<8x64xf32>, vector<64x128xf32>, vector<8x128xf32> -> vector<8x128xf32>
    %108 = arith.addf %104, %107 : vector<8x128xf32>
    %109 = vector.extract_strided_slice %92 {offsets = [32, 0], sizes = [8, 64], strides = [1, 1]} : vector<72x64xf32> to vector<8x64xf32>
    %110 = vector.extract_strided_slice %93 {offsets = [256, 0], sizes = [64, 128], strides = [1, 1]} : vector<576x128xf32> to vector<64x128xf32>
    %cst_46 = arith.constant dense<0.000000e+00> : vector<8x128xf32>
    %111 = tpu.matmul %109, %110, %cst_46 {dimension_numbers = #tpu.dot_dimension_numbers<[1], [0], [0], [1], [0, 0, 1, 1], [], []>} : vector<8x64xf32>, vector<64x128xf32>, vector<8x128xf32> -> vector<8x128xf32>
    %112 = arith.addf %108, %111 : vector<8x128xf32>
    %113 = vector.extract_strided_slice %92 {offsets = [40, 0], sizes = [8, 64], strides = [1, 1]} : vector<72x64xf32> to vector<8x64xf32>
    %114 = vector.extract_strided_slice %93 {offsets = [320, 0], sizes = [64, 128], strides = [1, 1]} : vector<576x128xf32> to vector<64x128xf32>
    %cst_47 = arith.constant dense<0.000000e+00> : vector<8x128xf32>
    %115 = tpu.matmul %113, %114, %cst_47 {dimension_numbers = #tpu.dot_dimension_numbers<[1], [0], [0], [1], [0, 0, 1, 1], [], []>} : vector<8x64xf32>, vector<64x128xf32>, vector<8x128xf32> -> vector<8x128xf32>
    %116 = arith.addf %112, %115 : vector<8x128xf32>
    %117 = vector.extract_strided_slice %92 {offsets = [48, 0], sizes = [8, 64], strides = [1, 1]} : vector<72x64xf32> to vector<8x64xf32>
    %118 = vector.extract_strided_slice %93 {offsets = [384, 0], sizes = [64, 128], strides = [1, 1]} : vector<576x128xf32> to vector<64x128xf32>
    %cst_48 = arith.constant dense<0.000000e+00> : vector<8x128xf32>
    %119 = tpu.matmul %117, %118, %cst_48 {dimension_numbers = #tpu.dot_dimension_numbers<[1], [0], [0], [1], [0, 0, 1, 1], [], []>} : vector<8x64xf32>, vector<64x128xf32>, vector<8x128xf32> -> vector<8x128xf32>
    %120 = arith.addf %116, %119 : vector<8x128xf32>
    %121 = vector.extract_strided_slice %92 {offsets = [56, 0], sizes = [8, 64], strides = [1, 1]} : vector<72x64xf32> to vector<8x64xf32>
    %122 = vector.extract_strided_slice %93 {offsets = [448, 0], sizes = [64, 128], strides = [1, 1]} : vector<576x128xf32> to vector<64x128xf32>
    %cst_49 = arith.constant dense<0.000000e+00> : vector<8x128xf32>
    %123 = tpu.matmul %121, %122, %cst_49 {dimension_numbers = #tpu.dot_dimension_numbers<[1], [0], [0], [1], [0, 0, 1, 1], [], []>} : vector<8x64xf32>, vector<64x128xf32>, vector<8x128xf32> -> vector<8x128xf32>
    %124 = arith.addf %120, %123 : vector<8x128xf32>
    %125 = vector.extract_strided_slice %92 {offsets = [64, 0], sizes = [8, 64], strides = [1, 1]} : vector<72x64xf32> to vector<8x64xf32>
    %126 = vector.extract_strided_slice %93 {offsets = [512, 0], sizes = [64, 128], strides = [1, 1]} : vector<576x128xf32> to vector<64x128xf32>
    %cst_50 = arith.constant dense<0.000000e+00> : vector<8x128xf32>
    %127 = tpu.matmul %125, %126, %cst_50 {dimension_numbers = #tpu.dot_dimension_numbers<[1], [0], [0], [1], [0, 0, 1, 1], [], []>} : vector<8x64xf32>, vector<64x128xf32>, vector<8x128xf32> -> vector<8x128xf32>
    %128 = arith.addf %124, %127 : vector<8x128xf32>
    %c0_51 = arith.constant 0 : index
    %c0_52 = arith.constant 0 : index
    %129 = vector.load %arg11[%c0_51, %c0_52] : memref<1x128xf32, #tpu.memory_space<vmem>>, vector<1x128xf32>
    %c0_53 = arith.constant 0 : index
    %c0_54 = arith.constant 0 : index
    %130 = vector.load %arg12[%c0_53, %c0_54] : memref<1x128xf32, #tpu.memory_space<vmem>>, vector<1x128xf32>
    %cst_55 = arith.constant dense<0.000000e+00> : vector<128xf32>
    %131 = vector.multi_reduction <add>, %128, %cst_55 [0] : vector<8x128xf32> to vector<128xf32>
    %132 = vector.shape_cast %131 : vector<128xf32> to vector<1x128xf32>
    %cst_56 = arith.constant 8.000000e+00 : f32
    %133 = vector.broadcast %cst_56 : f32 to vector<1x128xf32>
    %134 = arith.divf %132, %133 : vector<1x128xf32>
    %135 = vector.broadcast %134 : vector<1x128xf32> to vector<8x128xf32>
    %136 = arith.subf %128, %135 : vector<8x128xf32>
    %137 = arith.mulf %136, %136 : vector<8x128xf32>
    %cst_57 = arith.constant dense<0.000000e+00> : vector<128xf32>
    %138 = vector.multi_reduction <add>, %137, %cst_57 [0] : vector<8x128xf32> to vector<128xf32>
    %139 = vector.shape_cast %138 : vector<128xf32> to vector<1x128xf32>
    %cst_58 = arith.constant 8.000000e+00 : f32
    %140 = vector.broadcast %cst_58 : f32 to vector<1x128xf32>
    %141 = arith.divf %139, %140 : vector<1x128xf32>
    %cst_59 = arith.constant 9.99999974E-6 : f32
    %142 = vector.broadcast %cst_59 : f32 to vector<1x128xf32>
    %143 = arith.addf %141, %142 : vector<1x128xf32>
    %144 = math.rsqrt %143 : vector<1x128xf32>
    %145 = arith.mulf %129, %144 : vector<1x128xf32>
    %146 = arith.mulf %134, %145 : vector<1x128xf32>
    %147 = arith.subf %130, %146 : vector<1x128xf32>
    %148 = vector.broadcast %145 : vector<1x128xf32> to vector<8x128xf32>
    %149 = arith.mulf %128, %148 : vector<8x128xf32>
    %150 = vector.broadcast %147 : vector<1x128xf32> to vector<8x128xf32>
    %151 = arith.addf %149, %150 : vector<8x128xf32>
    %cst_60 = arith.constant 0.000000e+00 : f32
    %152 = vector.broadcast %cst_60 : f32 to vector<8x128xf32>
    %153 = arith.maximumf %151, %152 : vector<8x128xf32>
    %c0_61 = arith.constant 0 : index
    %c0_62 = arith.constant 0 : index
    %154 = vector.load %arg13[%c0_61, %c0_62] : memref<72x8xf32, #tpu.memory_space<vmem>>, vector<72x8xf32>
    %cst_63 = arith.constant dense<0.000000e+00> : vector<72x128xf32>
    %155 = tpu.matmul %154, %153, %cst_63 {dimension_numbers = #tpu.dot_dimension_numbers<[1], [0], [0], [1], [0, 0, 1, 1], [], []>} : vector<72x8xf32>, vector<8x128xf32>, vector<72x128xf32> -> vector<72x128xf32>
    %c0_64 = arith.constant 0 : index
    %c0_65 = arith.constant 0 : index
    %156 = vector.load %arg14[%c0_64, %c0_65] : memref<1152x128xf32, #tpu.memory_space<vmem>>, vector<1152x128xf32>
    %157 = vector.extract_strided_slice %155 {offsets = [0, 0], sizes = [8, 128], strides = [1, 1]} : vector<72x128xf32> to vector<8x128xf32>
    %158 = vector.extract_strided_slice %156 {offsets = [0, 0], sizes = [128, 128], strides = [1, 1]} : vector<1152x128xf32> to vector<128x128xf32>
    %cst_66 = arith.constant dense<0.000000e+00> : vector<8x128xf32>
    %159 = tpu.matmul %157, %158, %cst_66 {dimension_numbers = #tpu.dot_dimension_numbers<[1], [0], [0], [1], [0, 0, 1, 1], [], []>} : vector<8x128xf32>, vector<128x128xf32>, vector<8x128xf32> -> vector<8x128xf32>
    %160 = vector.extract_strided_slice %155 {offsets = [8, 0], sizes = [8, 128], strides = [1, 1]} : vector<72x128xf32> to vector<8x128xf32>
    %161 = vector.extract_strided_slice %156 {offsets = [128, 0], sizes = [128, 128], strides = [1, 1]} : vector<1152x128xf32> to vector<128x128xf32>
    %cst_67 = arith.constant dense<0.000000e+00> : vector<8x128xf32>
    %162 = tpu.matmul %160, %161, %cst_67 {dimension_numbers = #tpu.dot_dimension_numbers<[1], [0], [0], [1], [0, 0, 1, 1], [], []>} : vector<8x128xf32>, vector<128x128xf32>, vector<8x128xf32> -> vector<8x128xf32>
    %163 = arith.addf %159, %162 : vector<8x128xf32>
    %164 = vector.extract_strided_slice %155 {offsets = [16, 0], sizes = [8, 128], strides = [1, 1]} : vector<72x128xf32> to vector<8x128xf32>
    %165 = vector.extract_strided_slice %156 {offsets = [256, 0], sizes = [128, 128], strides = [1, 1]} : vector<1152x128xf32> to vector<128x128xf32>
    %cst_68 = arith.constant dense<0.000000e+00> : vector<8x128xf32>
    %166 = tpu.matmul %164, %165, %cst_68 {dimension_numbers = #tpu.dot_dimension_numbers<[1], [0], [0], [1], [0, 0, 1, 1], [], []>} : vector<8x128xf32>, vector<128x128xf32>, vector<8x128xf32> -> vector<8x128xf32>
    %167 = arith.addf %163, %166 : vector<8x128xf32>
    %168 = vector.extract_strided_slice %155 {offsets = [24, 0], sizes = [8, 128], strides = [1, 1]} : vector<72x128xf32> to vector<8x128xf32>
    %169 = vector.extract_strided_slice %156 {offsets = [384, 0], sizes = [128, 128], strides = [1, 1]} : vector<1152x128xf32> to vector<128x128xf32>
    %cst_69 = arith.constant dense<0.000000e+00> : vector<8x128xf32>
    %170 = tpu.matmul %168, %169, %cst_69 {dimension_numbers = #tpu.dot_dimension_numbers<[1], [0], [0], [1], [0, 0, 1, 1], [], []>} : vector<8x128xf32>, vector<128x128xf32>, vector<8x128xf32> -> vector<8x128xf32>
    %171 = arith.addf %167, %170 : vector<8x128xf32>
    %172 = vector.extract_strided_slice %155 {offsets = [32, 0], sizes = [8, 128], strides = [1, 1]} : vector<72x128xf32> to vector<8x128xf32>
    %173 = vector.extract_strided_slice %156 {offsets = [512, 0], sizes = [128, 128], strides = [1, 1]} : vector<1152x128xf32> to vector<128x128xf32>
    %cst_70 = arith.constant dense<0.000000e+00> : vector<8x128xf32>
    %174 = tpu.matmul %172, %173, %cst_70 {dimension_numbers = #tpu.dot_dimension_numbers<[1], [0], [0], [1], [0, 0, 1, 1], [], []>} : vector<8x128xf32>, vector<128x128xf32>, vector<8x128xf32> -> vector<8x128xf32>
    %175 = arith.addf %171, %174 : vector<8x128xf32>
    %176 = vector.extract_strided_slice %155 {offsets = [40, 0], sizes = [8, 128], strides = [1, 1]} : vector<72x128xf32> to vector<8x128xf32>
    %177 = vector.extract_strided_slice %156 {offsets = [640, 0], sizes = [128, 128], strides = [1, 1]} : vector<1152x128xf32> to vector<128x128xf32>
    %cst_71 = arith.constant dense<0.000000e+00> : vector<8x128xf32>
    %178 = tpu.matmul %176, %177, %cst_71 {dimension_numbers = #tpu.dot_dimension_numbers<[1], [0], [0], [1], [0, 0, 1, 1], [], []>} : vector<8x128xf32>, vector<128x128xf32>, vector<8x128xf32> -> vector<8x128xf32>
    %179 = arith.addf %175, %178 : vector<8x128xf32>
    %180 = vector.extract_strided_slice %155 {offsets = [48, 0], sizes = [8, 128], strides = [1, 1]} : vector<72x128xf32> to vector<8x128xf32>
    %181 = vector.extract_strided_slice %156 {offsets = [768, 0], sizes = [128, 128], strides = [1, 1]} : vector<1152x128xf32> to vector<128x128xf32>
    %cst_72 = arith.constant dense<0.000000e+00> : vector<8x128xf32>
    %182 = tpu.matmul %180, %181, %cst_72 {dimension_numbers = #tpu.dot_dimension_numbers<[1], [0], [0], [1], [0, 0, 1, 1], [], []>} : vector<8x128xf32>, vector<128x128xf32>, vector<8x128xf32> -> vector<8x128xf32>
    %183 = arith.addf %179, %182 : vector<8x128xf32>
    %184 = vector.extract_strided_slice %155 {offsets = [56, 0], sizes = [8, 128], strides = [1, 1]} : vector<72x128xf32> to vector<8x128xf32>
    %185 = vector.extract_strided_slice %156 {offsets = [896, 0], sizes = [128, 128], strides = [1, 1]} : vector<1152x128xf32> to vector<128x128xf32>
    %cst_73 = arith.constant dense<0.000000e+00> : vector<8x128xf32>
    %186 = tpu.matmul %184, %185, %cst_73 {dimension_numbers = #tpu.dot_dimension_numbers<[1], [0], [0], [1], [0, 0, 1, 1], [], []>} : vector<8x128xf32>, vector<128x128xf32>, vector<8x128xf32> -> vector<8x128xf32>
    %187 = arith.addf %183, %186 : vector<8x128xf32>
    %188 = vector.extract_strided_slice %155 {offsets = [64, 0], sizes = [8, 128], strides = [1, 1]} : vector<72x128xf32> to vector<8x128xf32>
    %189 = vector.extract_strided_slice %156 {offsets = [1024, 0], sizes = [128, 128], strides = [1, 1]} : vector<1152x128xf32> to vector<128x128xf32>
    %cst_74 = arith.constant dense<0.000000e+00> : vector<8x128xf32>
    %190 = tpu.matmul %188, %189, %cst_74 {dimension_numbers = #tpu.dot_dimension_numbers<[1], [0], [0], [1], [0, 0, 1, 1], [], []>} : vector<8x128xf32>, vector<128x128xf32>, vector<8x128xf32> -> vector<8x128xf32>
    %191 = arith.addf %187, %190 : vector<8x128xf32>
    %c0_75 = arith.constant 0 : index
    %c0_76 = arith.constant 0 : index
    %192 = vector.load %arg15[%c0_75, %c0_76] : memref<1x128xf32, #tpu.memory_space<vmem>>, vector<1x128xf32>
    %c0_77 = arith.constant 0 : index
    %c0_78 = arith.constant 0 : index
    %193 = vector.load %arg16[%c0_77, %c0_78] : memref<1x128xf32, #tpu.memory_space<vmem>>, vector<1x128xf32>
    %cst_79 = arith.constant dense<0.000000e+00> : vector<128xf32>
    %194 = vector.multi_reduction <add>, %191, %cst_79 [0] : vector<8x128xf32> to vector<128xf32>
    %195 = vector.shape_cast %194 : vector<128xf32> to vector<1x128xf32>
    %cst_80 = arith.constant 8.000000e+00 : f32
    %196 = vector.broadcast %cst_80 : f32 to vector<1x128xf32>
    %197 = arith.divf %195, %196 : vector<1x128xf32>
    %198 = vector.broadcast %197 : vector<1x128xf32> to vector<8x128xf32>
    %199 = arith.subf %191, %198 : vector<8x128xf32>
    %200 = arith.mulf %199, %199 : vector<8x128xf32>
    %cst_81 = arith.constant dense<0.000000e+00> : vector<128xf32>
    %201 = vector.multi_reduction <add>, %200, %cst_81 [0] : vector<8x128xf32> to vector<128xf32>
    %202 = vector.shape_cast %201 : vector<128xf32> to vector<1x128xf32>
    %cst_82 = arith.constant 8.000000e+00 : f32
    %203 = vector.broadcast %cst_82 : f32 to vector<1x128xf32>
    %204 = arith.divf %202, %203 : vector<1x128xf32>
    %cst_83 = arith.constant 9.99999974E-6 : f32
    %205 = vector.broadcast %cst_83 : f32 to vector<1x128xf32>
    %206 = arith.addf %204, %205 : vector<1x128xf32>
    %207 = math.rsqrt %206 : vector<1x128xf32>
    %208 = arith.mulf %192, %207 : vector<1x128xf32>
    %209 = arith.mulf %197, %208 : vector<1x128xf32>
    %210 = arith.subf %193, %209 : vector<1x128xf32>
    %211 = vector.broadcast %208 : vector<1x128xf32> to vector<8x128xf32>
    %212 = arith.mulf %191, %211 : vector<8x128xf32>
    %213 = vector.broadcast %210 : vector<1x128xf32> to vector<8x128xf32>
    %214 = arith.addf %212, %213 : vector<8x128xf32>
    %cst_84 = arith.constant 0.000000e+00 : f32
    %215 = vector.broadcast %cst_84 : f32 to vector<8x128xf32>
    %216 = arith.maximumf %214, %215 : vector<8x128xf32>
    %c0_85 = arith.constant 0 : index
    %c0_86 = arith.constant 0 : index
    %217 = vector.load %arg17[%c0_85, %c0_86] : memref<8x128xf32, #tpu.memory_space<vmem>>, vector<8x128xf32>
    tpu.vector_store %arg17[%c0_85, %c0_86], %216 {strides = array<i32>} : memref<8x128xf32, #tpu.memory_space<vmem>>, vector<8x128xf32>,
    return
  }
  func.func @transform_0(%arg0: i32) -> (i32, i32) {
    %c0_i32 = arith.constant 0 : i32
    %c0_i32_0 = arith.constant 0 : i32
    %c0_i32_1 = arith.constant 0 : i32
    return %c0_i32, %c0_i32_0 : i32, i32
  }
  func.func @transform_1(%arg0: i32) -> (i32, i32) {
    %c0_i32 = arith.constant 0 : i32
    %c0_i32_0 = arith.constant 0 : i32
    %c0_i32_1 = arith.constant 0 : i32
    return %c0_i32, %c0_i32_0 : i32, i32
  }
  func.func @transform_2(%arg0: i32) -> (i32, i32) {
    %c0_i32 = arith.constant 0 : i32
    %c0_i32_0 = arith.constant 0 : i32
    %c0_i32_1 = arith.constant 0 : i32
    return %c0_i32, %c0_i32_0 : i32, i32
  }
  func.func @transform_3(%arg0: i32) -> (i32, i32) {
    %c0_i32 = arith.constant 0 : i32
    %c0_i32_0 = arith.constant 0 : i32
    %c0_i32_1 = arith.constant 0 : i32
    return %c0_i32, %c0_i32_0 : i32, i32
  }
  func.func @transform_4(%arg0: i32) -> (i32, i32) {
    %c0_i32 = arith.constant 0 : i32
    %c0_i32_0 = arith.constant 0 : i32
    %c0_i32_1 = arith.constant 0 : i32
    return %c0_i32, %c0_i32_0 : i32, i32
  }
  func.func @transform_5(%arg0: i32) -> (i32, i32) {
    %c0_i32 = arith.constant 0 : i32
    %c0_i32_0 = arith.constant 0 : i32
    %c0_i32_1 = arith.constant 0 : i32
    return %c0_i32, %c0_i32_0 : i32, i32
  }
  func.func @transform_6(%arg0: i32) -> (i32, i32) {
    %c0_i32 = arith.constant 0 : i32
    %c0_i32_0 = arith.constant 0 : i32
    %c0_i32_1 = arith.constant 0 : i32
    return %c0_i32, %c0_i32_0 : i32, i32
  }
  func.func @transform_7(%arg0: i32) -> (i32, i32) {
    %c0_i32 = arith.constant 0 : i32
    %c0_i32_0 = arith.constant 0 : i32
    %c0_i32_1 = arith.constant 0 : i32
    return %c0_i32, %c0_i32_0 : i32, i32
  }
  func.func @transform_8(%arg0: i32) -> (i32, i32) {
    %c0_i32 = arith.constant 0 : i32
    %c0_i32_0 = arith.constant 0 : i32
    %c0_i32_1 = arith.constant 0 : i32
    return %c0_i32, %c0_i32_0 : i32, i32
  }
  func.func @transform_9(%arg0: i32) -> (i32, i32) {
    %c0_i32 = arith.constant 0 : i32
    %c0_i32_0 = arith.constant 0 : i32
    %c0_i32_1 = arith.constant 0 : i32
    return %c0_i32, %c0_i32_0 : i32, i32
  }
  func.func @transform_10(%arg0: i32) -> (i32, i32) {
    %c0_i32 = arith.constant 0 : i32
    %c0_i32_0 = arith.constant 0 : i32
    %c0_i32_1 = arith.constant 0 : i32
    return %c0_i32, %c0_i32_0 : i32, i32
  }
  func.func @transform_11(%arg0: i32) -> (i32, i32) {
    %c0_i32 = arith.constant 0 : i32
    %c0_i32_0 = arith.constant 0 : i32
    %c0_i32_1 = arith.constant 0 : i32
    return %c0_i32, %c0_i32_0 : i32, i32
  }
  func.func @transform_12(%arg0: i32) -> (i32, i32) {
    %c0_i32 = arith.constant 0 : i32
    %c0_i32_0 = arith.constant 0 : i32
    %c0_i32_1 = arith.constant 0 : i32
    return %c0_i32, %c0_i32_0 : i32, i32
  }
  func.func @transform_13(%arg0: i32) -> (i32, i32) {
    %c0_i32 = arith.constant 0 : i32
    %c0_i32_0 = arith.constant 0 : i32
    %c0_i32_1 = arith.constant 0 : i32
    return %c0_i32, %c0_i32_0 : i32, i32
  }
  func.func @transform_14(%arg0: i32) -> (i32, i32) {
    %c0_i32 = arith.constant 0 : i32
    %c0_i32_0 = arith.constant 0 : i32
    %c0_i32_1 = arith.constant 0 : i32
    return %c0_i32, %c0_i32_0 : i32, i32
  }
  func.func @transform_15(%arg0: i32) -> (i32, i32) {
    %c0_i32 = arith.constant 0 : i32
    %c0_i32_0 = arith.constant 0 : i32
    %c0_i32_1 = arith.constant 0 : i32
    return %c0_i32, %c0_i32_0 : i32, i32
  }
  func.func @transform_16(%arg0: i32) -> (i32, i32) {
    %c0_i32 = arith.constant 0 : i32
    %c0_i32_0 = arith.constant 0 : i32
    %c0_i32_1 = arith.constant 0 : i32
    return %c0_i32, %c0_i32_0 : i32, i32
  }
}

</mosaic_0001>

<bundles_post_ra>
// kernel: cnn_encoder_forward.1
= control target key start
LH: loop header
LB: loop body
LE: loop exit
PB: predicated region body
PF: predicated region fallthrough
CT: control target
= control target key end

     0   :  { %s7380_s0 = inlined_call_operand.vmem [shape: f32[128,9], index: 0, kind: input, shape index: {}]   ;;  %s7381_s1 = inlined_call_operand.vmem [shape: f32[9,64], index: 1, kind: input, shape index: {}]   ;;  %s7382_s2 = inlined_call_operand.vmem [shape: f32[1,64], index: 2, kind: input, shape index: {}]   ;;  %s7383_s3 = inlined_call_operand.vmem [shape: f32[1,64], index: 3, kind: input, shape index: {}]   ;;  %s7384_s4 = inlined_call_operand.vmem [shape: f32[288,128], index: 4, kind: input, shape index: {}]   ;;  %s7385_s5 = inlined_call_operand.vmem [shape: f32[576,64], index: 5, kind: input, shape index: {}]   ;;  %s7386_s6 = inlined_call_operand.vmem [shape: f32[1,64], index: 6, kind: input, shape index: {}]   ;;  %s7387_s7 = inlined_call_operand.vmem [shape: f32[1,64], index: 7, kind: input, shape index: {}]   ;;  %s7388_s8 = inlined_call_operand.vmem [shape: f32[72,32], index: 8, kind: input, shape index: {}]   ;;  %s7389_s9 = inlined_call_operand.vmem [shape: f32[576,128], index: 9, kind: input, shape index: {}]   ;;  %s7390_s10 = inlined_call_operand.vmem [shape: f32[1,128], index: 10, kind: input, shape index: {}]   ;;  %s7391_s11 = inlined_call_operand.vmem [shape: f32[1,128], index: 11, kind: input, shape index: {}]   ;;  %s7392_s12 = inlined_call_operand.vmem [shape: f32[72,8], index: 12, kind: input, shape index: {}]   ;;  %s7393_s13 = inlined_call_operand.vmem [shape: f32[1152,128], index: 13, kind: input, shape index: {}]   ;;  %s7394_s14 = inlined_call_operand.vmem [shape: f32[1,128], index: 14, kind: input, shape index: {}]   ;;  %s7395_s15 = inlined_call_operand.vmem [shape: f32[1,128], index: 15, kind: input, shape index: {}]   ;;  %s7396_s16 = inlined_call_operand.hbm [shape: f32[8,128], index: 16, kind: output, shape index: {}]  }
   0x1   :  { %7398 = sst [smem:[#allocation5_spill]] %s7380_s0 }
   0x2   :  { %v70_v0 = vld [vmem:[%s7381_s1] sm:$0xff]  ;;  %v71_v1 = vld [vmem:[%s7381_s1 + $0x8] sm:$0x1]  ;;  %vm121_vm0 = vcmask 1040384   ;;  %s7399_s27 = sld [smem:[#allocation5_spill]]  ;;  %vm5661_vm1 = vmmov 1  }
   0x3   :  { %v5049_v3 = vpack.c.bf16 %v71_v1, %v70_v0  ;;  %vm5050_vm2 = vmpackc.low %vm121_vm0, %vm5661_vm1  ;;  %vm72_vm3 = vcmask 72704  }
   0x5   :  { %5051 = vmatprep.subr.msk.bf16.mxu0 %vm5050_vm2, %v5049_v3 }
   0x6   :  { %5054 = vmatpush3.bf16.msk.msra.mxu0 %vm5050_vm2, %v5049_v3 }
   0x8   :  { %v54_v2 = vld [vmem:[%s7399_s27] sm:$0xff]  ;;  %v55_v4 = vld [vmem:[%s7399_s27 + $0x8] sm:$0xff]  ;;  %v56_v5 = vld [vmem:[%s7399_s27 + $0x10] sm:$0xff] }
   0x9   :  { %4191 = vmatprep.mubr.msk.f32.mxu0 %vm72_vm3, %v54_v2 }
   0xa   :  { %21 = vsyncpa [#allocation3], 0  ;;  %4192 = vmatmul.mubr.msk.f32.vlgmr.msra.gmra.mrb[0].mxu0 %vm72_vm3, %v55_v4  ;;  %v57_v6 = vld [vmem:[%s7399_s27 + $0x18] sm:$0xff]  ;;  %v58_v7 = vld [vmem:[%s7399_s27 + $0x20] sm:$0xff]  ;;  %vm272_vm4 = vcmask 523264   ;;  %vm5663_vm5 = vmmov 0  }
   0xb   :  { %4194 = vmatprep.mubr.msk.f32.mxu0 %vm72_vm3, %v56_v5  ;;  %v59_v8 = vld [vmem:[%s7399_s27 + $0x28] sm:$0xff]  ;;  %v60_v9 = vld [vmem:[%s7399_s27 + $0x30] sm:$0xff]  ;;  %v61_v10 = vld [vmem:[%s7399_s27 + $0x38] sm:$0xff]  ;;  %vm1778_vm6 = vcmask 261120   ;;  %vm2700_vm7 = vcmask 64512  }
   0xc   :  { %v62_v11 = vld [vmem:[%s7399_s27 + $0x40] sm:$0xff]  ;;  %v63_v12 = vld [vmem:[%s7399_s27 + $0x48] sm:$0xff]  ;;  %v64_v13 = vld [vmem:[%s7399_s27 + $0x50] sm:$0xff] }
   0xd   :  { %v65_v14 = vld [vmem:[%s7399_s27 + $0x58] sm:$0xff]  ;;  %v66_v15 = vld [vmem:[%s7399_s27 + $0x60] sm:$0xff]  ;;  %v67_v16 = vld [vmem:[%s7399_s27 + $0x68] sm:$0xff] }
   0xe   :  { %4195 = vmatmul.mubr.msk.f32.gmra.mrb[2].mxu0 %vm72_vm3, %v57_v6  ;;  %v68_v17 = vld [vmem:[%s7399_s27 + $0x70] sm:$0xff]  ;;  %v69_v18 = vld [vmem:[%s7399_s27 + $0x78] sm:$0xff]  ;;  %v447_v63 = vld [vmem:[%s7384_s4] sm:$0xff] }
   0xf   :  { %4197 = vmatprep.mubr.msk.f32.mxu0 %vm72_vm3, %v58_v7  ;;  %4247 = vmatprep.mubr.f32.mxu1 %v447_v63 }
  0x12   :  { %4198 = vmatmul.mubr.msk.f32.gmra.mrb[4].mxu0 %vm72_vm3, %v59_v8 }
  0x13   :  { %4200 = vmatprep.mubr.msk.f32.mxu0 %vm72_vm3, %v60_v9 }
  0x16   :  { %4201 = vmatmul.mubr.msk.f32.gmra.mrb[6].mxu0 %vm72_vm3, %v61_v10 }
  0x17   :  { %4203 = vmatprep.mubr.msk.f32.mxu0 %vm72_vm3, %v62_v11 }
  0x1a   :  { %4204 = vmatmul.mubr.msk.f32.gmra.mrb[8].mxu0 %vm72_vm3, %v63_v12 }
  0x1b   :  { %4206 = vmatprep.mubr.msk.f32.mxu0 %vm72_vm3, %v64_v13 }
  0x1e   :  { %4207 = vmatmul.mubr.msk.f32.gmra.mrb[10].mxu0 %vm72_vm3, %v65_v14 }
  0x1f   :  { %4209 = vmatprep.mubr.msk.f32.mxu0 %vm72_vm3, %v66_v15 }
  0x22   :  { %4210 = vmatmul.mubr.msk.f32.gmra.mrb[12].mxu0 %vm72_vm3, %v67_v16 }
  0x23   :  { %4212 = vmatprep.mubr.msk.f32.mxu0 %vm72_vm3, %v68_v17 }
  0x26   :  { %4213 = vmatmul.mubr.msk.f32.gmra.mrb[14].mxu0 %vm72_vm3, %v69_v18 }
  0xdd   :  { %v5821_v19 = vpop.f32.mrb[0].mxu0 }
  0xde   :  { %v274_v20 = vsel %vm272_vm4, %v5821_v19, 0.0  ;;  %v5825_v21 = vpop.f32.mrb[1].mxu0 }
  0xdf   :  { %v273_v22 = vsel %vm272_vm4, %v5825_v21, 0.0 }
  0xe0   :  { %v275_v23 = vadd.f32 %v274_v20, %v273_v22 }
  0xe1   :  { %v5829_v24 = vpop.f32.mrb[2].mxu0 }
  0xe2   :  { %v5831_v25 = vpop.f32.mrb[3].mxu0  ;;  %v278_v28 = vsel %vm272_vm4, %v5829_v24, 0.0 }
  0xe3   :  { %v276_v26 = vsel %vm272_vm4, %v5831_v25, 0.0 }
  0xe4   :  { %v277_v27 = vadd.f32 %v276_v26, %v275_v23 }
  0xe5   :  { %v5837_v29 = vpop.f32.mrb[4].mxu0 }
  0xe6   :  { %v5839_v30 = vpop.f32.mrb[5].mxu0  ;;  %v279_v31 = vadd.f32 %v278_v28, %v277_v27  ;;  %v282_v34 = vsel %vm272_vm4, %v5837_v29, 0.0 }
  0xe7   :  { %v280_v32 = vsel %vm272_vm4, %v5839_v30, 0.0 }
  0xe8   :  { %v281_v33 = vadd.f32 %v280_v32, %v279_v31 }
  0xe9   :  { %v5845_v35 = vpop.f32.mrb[6].mxu0 }
  0xea   :  { %v5847_v36 = vpop.f32.mrb[7].mxu0  ;;  %v283_v37 = vadd.f32 %v282_v34, %v281_v33  ;;  %v286_v40 = vsel %vm272_vm4, %v5845_v35, 0.0 }
  0xeb   :  { %v284_v38 = vsel %vm272_vm4, %v5847_v36, 0.0 }
  0xec   :  { %v285_v39 = vadd.f32 %v284_v38, %v283_v37 }
  0xed   :  { %v5853_v41 = vpop.f32.mrb[8].mxu0 }
  0xee   :  { %v5855_v42 = vpop.f32.mrb[9].mxu0  ;;  %v287_v43 = vadd.f32 %v286_v40, %v285_v39  ;;  %v290_v46 = vsel %vm272_vm4, %v5853_v41, 0.0 }
  0xef   :  { %v288_v44 = vsel %vm272_vm4, %v5855_v42, 0.0 }
  0xf0   :  { %v289_v45 = vadd.f32 %v288_v44, %v287_v43 }
  0xf1   :  { %v5861_v47 = vpop.f32.mrb[10].mxu0 }
  0xf2   :  { %v5863_v48 = vpop.f32.mrb[11].mxu0  ;;  %v291_v49 = vadd.f32 %v290_v46, %v289_v45  ;;  %v294_v52 = vsel %vm272_vm4, %v5861_v47, 0.0 }
  0xf3   :  { %v292_v50 = vsel %vm272_vm4, %v5863_v48, 0.0 }
  0xf4   :  { %v293_v51 = vadd.f32 %v292_v50, %v291_v49 }
  0xf5   :  { %v5869_v53 = vpop.f32.mrb[12].mxu0 }
  0xf6   :  { %v5871_v54 = vpop.f32.mrb[13].mxu0  ;;  %v295_v55 = vadd.f32 %v294_v52, %v293_v51  ;;  %v298_v58 = vsel %vm272_vm4, %v5869_v53, 0.0 }
  0xf7   :  { %v296_v56 = vsel %vm272_vm4, %v5871_v54, 0.0 }
  0xf8   :  { %v297_v57 = vadd.f32 %v296_v56, %v295_v55 }
  0xf9   :  { %v5877_v59 = vpop.f32.mrb[14].mxu0 }
  0xfa   :  { %v5879_v60 = vpop.f32.mrb[15].mxu0  ;;  %v299_v61 = vadd.f32 %v298_v58, %v297_v57  ;;  %v302_v1 = vsel %vm272_vm4, %v5877_v59, 0.0 }
  0xfb   :  { %v300_v62 = vsel %vm272_vm4, %v5879_v60, 0.0 }
  0xfc   :  { %v301_v0 = vadd.f32 %v300_v62, %v299_v61 }
  0xfe   :  { %v303_v2 = vadd.f32 %v302_v1, %v301_v0 }
 0x100   :  { %v304_v3 = vrot.slane %v303_v2, 4 }
 0x102   :  { %v305_v4 = vadd.f32 %v304_v3, %v303_v2 }
 0x104   :  { %v306_v5 = vrot.slane %v305_v4, 2 }
 0x106   :  { %v307_v6 = vadd.f32 %v306_v5, %v305_v4 }
 0x108   :  { %v308_v7 = vrot.slane %v307_v6, 1 }
 0x10a   :  { %v309_v8 = vadd.f32 %v308_v7, %v307_v6 }
 0x10c   :  { %v5888_v9 = vmul.f32 0.0078125, %v309_v8 }
 0x10e   :  { %v312_v10 = vsub.f32 %v5825_v21, %v5888_v9  ;;  %v313_v11 = vsub.f32 %v5821_v19, %v5888_v9  ;;  %v314_v12 = vsub.f32 %v5831_v25, %v5888_v9  ;;  %v315_v13 = vsub.f32 %v5829_v24, %v5888_v9 }
 0x10f   :  { %v316_v14 = vsub.f32 %v5839_v30, %v5888_v9  ;;  %v317_v15 = vsub.f32 %v5837_v29, %v5888_v9  ;;  %v318_v16 = vsub.f32 %v5847_v36, %v5888_v9  ;;  %v319_v17 = vsub.f32 %v5845_v35, %v5888_v9 }
 0x110   :  { %v320_v18 = vsub.f32 %v5855_v42, %v5888_v9  ;;  %v321_v20 = vsub.f32 %v5853_v41, %v5888_v9  ;;  %v322_v22 = vsub.f32 %v5863_v48, %v5888_v9  ;;  %v323_v23 = vsub.f32 %v5861_v47, %v5888_v9 }
 0x111   :  { %v324_v26 = vsub.f32 %v5871_v54, %v5888_v9  ;;  %v325_v27 = vsub.f32 %v5869_v53, %v5888_v9  ;;  %v326_v28 = vsub.f32 %v5879_v60, %v5888_v9  ;;  %v327_v31 = vsub.f32 %v5877_v59, %v5888_v9 }
 0x112   :  { %v328_v32 = vmul.f32 %v312_v10, %v312_v10  ;;  %v329_v33 = vmul.f32 %v313_v11, %v313_v11  ;;  %v330_v34 = vmul.f32 %v314_v12, %v314_v12  ;;  %v331_v37 = vmul.f32 %v315_v13, %v315_v13 }
 0x113   :  { %v332_v43 = vmul.f32 %v316_v14, %v316_v14  ;;  %v333_v46 = vmul.f32 %v317_v15, %v317_v15  ;;  %v334_v51 = vmul.f32 %v318_v16, %v318_v16  ;;  %v335_v56 = vmul.f32 %v319_v17, %v319_v17 }
 0x114   :  { %v344_v38 = vsel %vm272_vm4, %v328_v32, 0.0  ;;  %v345_v39 = vsel %vm272_vm4, %v329_v33, 0.0  ;;  %v347_v44 = vsel %vm272_vm4, %v330_v34, 0.0  ;;  %v349_v49 = vsel %vm272_vm4, %v331_v37, 0.0 }
 0x115   :  { %v346_v40 = vadd.f32 %v345_v39, %v344_v38  ;;  %v351_v52 = vsel %vm272_vm4, %v332_v43, 0.0  ;;  %v353_v57 = vsel %vm272_vm4, %v333_v46, 0.0  ;;  %v336_v61 = vmul.f32 %v320_v18, %v320_v18 }
 0x116   :  { %v355_v62 = vsel %vm272_vm4, %v334_v51, 0.0  ;;  %v337_v0 = vmul.f32 %v321_v20, %v321_v20  ;;  %v357_v1 = vsel %vm272_vm4, %v335_v56, 0.0  ;;  %v338_v3 = vmul.f32 %v322_v22, %v322_v22  ;;  %v270_v56 = vld [vmem:[%s7382_s2] sm:$0x1] }
 0x117   :  { %v348_v45 = vadd.f32 %v347_v44, %v346_v40  ;;  %v359_v4 = vsel %vm272_vm4, %v336_v61, 0.0  ;;  %v339_v6 = vmul.f32 %v323_v23, %v323_v23  ;;  %v340_v10 = vmul.f32 %v324_v26, %v324_v26  ;;  %v737_v44 = vld [vmem:[%s7385_s5 + $0x48] sm:$0xff] }
 0x118   :  { %v361_v7 = vsel %vm272_vm4, %v337_v0, 0.0  ;;  %v363_v11 = vsel %vm272_vm4, %v338_v3, 0.0  ;;  %v341_v13 = vmul.f32 %v325_v27, %v325_v27  ;;  %v342_v16 = vmul.f32 %v326_v28, %v326_v28 }
 0x119   :  { %v350_v50 = vadd.f32 %v349_v49, %v348_v45  ;;  %v365_v14 = vsel %vm272_vm4, %v339_v6, 0.0  ;;  %v367_v17 = vsel %vm272_vm4, %v340_v10, 0.0  ;;  %v343_v20 = vmul.f32 %v327_v31, %v327_v31  ;;  %v736_v31 = vld [vmem:[%s7385_s5 + $0x40] sm:$0xff]  ;;  %v738_v45 = vld [vmem:[%s7385_s5 + $0x50] sm:$0xff] }
 0x11a   :  { %v369_v22 = vsel %vm272_vm4, %v341_v13, 0.0  ;;  %v371_v23 = vsel %vm272_vm4, %v342_v16, 0.0  ;;  %v5087_v49 = vpack.c.bf16 %v737_v44, %v736_v31 }
 0x11b   :  { %v352_v55 = vadd.f32 %v351_v52, %v350_v50  ;;  %v373_v26 = vsel %vm272_vm4, %v343_v20, 0.0  ;;  %v739_v50 = vld [vmem:[%s7385_s5 + $0x58] sm:$0xff]  ;;  %v388_v52 = vlaneseq }
 0x11c   :  { %v5091_v51 = vpack.c.bf16 %v739_v50, %v738_v45  ;;  %5088 = vmatprep.subr.bf16.mxu0 %v5087_v49 }
 0x11d   :  { %v354_v58 = vadd.f32 %v353_v57, %v352_v55  ;;  %5090 = vmatpush3.bf16.msra.mxu0 %v5087_v49  ;;  %v389_v55 = vshrl.u32 %v388_v52, 7 }
 0x11e   :  { %5092 = vmatprep.subr.bf16.mxu0 %v5091_v51 }
 0x11f   :  { %v356_v63 = vadd.f32 %v355_v62, %v354_v58  ;;  %v5953_v57 = vsub.s32 0, %v389_v55  ;;  %v271_v62 = vld [vmem:[%s7383_s3] sm:$0x1] }
 0x121   :  { %v358_v2 = vadd.f32 %v357_v1, %v356_v63  ;;  %5094 = vmatpush3.bf16.msra.mxu0 %v5091_v51 }
 0x123   :  { %v360_v5 = vadd.f32 %v359_v4, %v358_v2 }
 0x125   :  { %v362_v8 = vadd.f32 %v361_v7, %v360_v5 }
 0x127   :  { %v364_v12 = vadd.f32 %v363_v11, %v362_v8 }
 0x129   :  { %v366_v15 = vadd.f32 %v365_v14, %v364_v12 }
 0x12b   :  { %v368_v18 = vadd.f32 %v367_v17, %v366_v15 }
 0x12d   :  { %v370_v32 = vadd.f32 %v369_v22, %v368_v18 }
 0x12f   :  { %v372_v33 = vadd.f32 %v371_v23, %v370_v32 }
 0x131   :  { %v374_v34 = vadd.f32 %v373_v26, %v372_v33 }
 0x133   :  { %v375_v37 = vrot.slane %v374_v34, 4 }
 0x135   :  { %v376_v38 = vadd.f32 %v375_v37, %v374_v34 }
 0x137   :  { %v377_v27 = vrot.slane %v376_v38, 2 }
 0x139   :  { %v378_v39 = vadd.f32 %v377_v27, %v376_v38 }
 0x13b   :  { %v379_v40 = vrot.slane %v378_v39, 1 }
 0x13d   :  { %v380_v43 = vadd.f32 %v379_v40, %v378_v39 }
 0x13f   :  { %v381_v28 = vmul.f32 0.0078125, %v380_v43 }
 0x141   :  { %v382_v46 = vadd.f32 1e-05, %v381_v28 }
 0x143   :  { %5629 = vrsqrt.f32 %v382_v46 }
 0x14d   :  { %v5630_v58 = vpop.eup %5629 }
 0x14e   :  { %v384_v61 = vmul.f32 %v5630_v58, %v270_v56 }
 0x150   :  { %v385_v63 = vmul.f32 %v384_v61, %v5888_v9  ;;  %v391_v0 = vrot.slane %v384_v61, %v5953_v57 }
 0x152   :  { %v386_v1 = vsub.f32 %v271_v62, %v385_v63  ;;  %v407_v2 = vmul.f32 %v391_v0, %v5879_v60  ;;  %v393_v3 = vmul.f32 %v391_v0, %v5825_v21  ;;  %v394_v4 = vmul.f32 %v5821_v19, %v391_v0  ;;  %v450_v62 = vld [vmem:[%s7384_s4 + $0x18] sm:$0xff]  ;;  %v451_v63 = vld [vmem:[%s7384_s4 + $0x20] sm:$0xff] }
 0x153   :  { %v395_v5 = vmul.f32 %v391_v0, %v5831_v25  ;;  %v396_v6 = vmul.f32 %v5829_v24, %v391_v0  ;;  %v397_v7 = vmul.f32 %v391_v0, %v5839_v30  ;;  %v398_v8 = vmul.f32 %v5837_v29, %v391_v0 }
 0x154   :  { %v413_v10 = vrot.slane %v386_v1, %v5953_v57  ;;  %v399_v9 = vmul.f32 %v391_v0, %v5847_v36  ;;  %v400_v11 = vmul.f32 %v5845_v35, %v391_v0  ;;  %v401_v60 = vmul.f32 %v391_v0, %v5855_v42  ;;  %v453_v1 = vld [vmem:[%s7384_s4 + $0x30] sm:$0xff] }
 0x155   :  { %v402_v21 = vmul.f32 %v5853_v41, %v391_v0  ;;  %v403_v19 = vmul.f32 %v391_v0, %v5863_v48  ;;  %v404_v25 = vmul.f32 %v5861_v47, %v391_v0  ;;  %v405_v24 = vmul.f32 %v391_v0, %v5871_v54 }
 0x156   :  { %v429_v12 = vadd.f32 %v413_v10, %v407_v2  ;;  %v415_v30 = vadd.f32 %v413_v10, %v393_v3  ;;  %v416_v13 = vadd.f32 %v413_v10, %v394_v4  ;;  %v417_v29 = vadd.f32 %v413_v10, %v395_v5  ;;  %v454_v2 = vld [vmem:[%s7384_s4 + $0x38] sm:$0xff]  ;;  %v455_v3 = vld [vmem:[%s7384_s4 + $0x40] sm:$0xff]  ;;  %v456_v4 = vld [vmem:[%s7384_s4 + $0x48] sm:$0xff] }
 0x157   :  { %v418_v14 = vadd.f32 %v413_v10, %v396_v6  ;;  %v419_v15 = vadd.f32 %v413_v10, %v397_v7  ;;  %v420_v16 = vadd.f32 %v413_v10, %v398_v8  ;;  %v421_v36 = vadd.f32 %v413_v10, %v399_v9  ;;  %v457_v5 = vld [vmem:[%s7384_s4 + $0x50] sm:$0xff]  ;;  %v458_v6 = vld [vmem:[%s7384_s4 + $0x58] sm:$0xff]  ;;  %v459_v7 = vld [vmem:[%s7384_s4 + $0x60] sm:$0xff] }
 0x158   :  { %v431_v17 = vmax.f32 %v415_v30, 0.0  ;;  %v432_v35 = vmax.f32 %v416_v13, 0.0  ;;  %v433_v18 = vmax.f32 %v417_v29, 0.0  ;;  %v422_v42 = vadd.f32 %v413_v10, %v400_v11  ;;  %v460_v8 = vld [vmem:[%s7384_s4 + $0x68] sm:$0xff]  ;;  %v462_v9 = vld [vmem:[%s7384_s4 + $0x78] sm:$0xff]  ;;  %v463_v11 = vld [vmem:[%s7384_s4 + $0x80] sm:$0xff] }
 0x159   :  { %v434_v20 = vmax.f32 %v418_v14, 0.0  ;;  %v435_v41 = vmax.f32 %v419_v15, 0.0  ;;  %v436_v22 = vmax.f32 %v420_v16, 0.0  ;;  %v437_v48 = vmax.f32 %v421_v36, 0.0  ;;  %v470_v30 = vld [vmem:[%s7384_s4 + $0xb8] sm:$0xff]  ;;  %v471_v13 = vld [vmem:[%s7384_s4 + $0xc0] sm:$0xff] }
 0x15a   :  { %v5055_v32 = vpack.c.bf16 %v432_v35, %v431_v17  ;;  %v438_v47 = vmax.f32 %v422_v42, 0.0  ;;  %v423_v23 = vadd.f32 %v413_v10, %v401_v60  ;;  %v424_v54 = vadd.f32 %v413_v10, %v402_v21  ;;  %v464_v60 = vld [vmem:[%s7384_s4 + $0x88] sm:$0xff]  ;;  %v465_v21 = vld [vmem:[%s7384_s4 + $0x90] sm:$0xff]  ;;  %v474_v15 = vld [vmem:[%s7384_s4 + $0xd8] sm:$0xff] }
 0x15b   :  { %v5059_v33 = vpack.c.bf16 %v434_v20, %v433_v18  ;;  %v5063_v26 = vpack.c.bf16 %v436_v22, %v435_v41  ;;  %v425_v34 = vadd.f32 %v413_v10, %v403_v19  ;;  %v426_v37 = vadd.f32 %v413_v10, %v404_v25  ;;  %v466_v19 = vld [vmem:[%s7384_s4 + $0x98] sm:$0xff]  ;;  %v467_v25 = vld [vmem:[%s7384_s4 + $0xa0] sm:$0xff]  ;;  %v472_v29 = vld [vmem:[%s7384_s4 + $0xc8] sm:$0xff] }
 0x15c   :  { %5056 = vmatprep.subr.bf16.mxu1 %v5055_v32  ;;  %v5067_v38 = vpack.c.bf16 %v438_v47, %v437_v48  ;;  %v439_v27 = vmax.f32 %v423_v23, 0.0  ;;  %v440_v39 = vmax.f32 %v424_v54, 0.0  ;;  %v406_v40 = vmul.f32 %v5869_v53, %v391_v0  ;;  %v448_v53 = vld [vmem:[%s7384_s4 + $0x8] sm:$0xff]  ;;  %v473_v14 = vld [vmem:[%s7384_s4 + $0xd0] sm:$0xff]  ;;  %v475_v16 = vld [vmem:[%s7384_s4 + $0xe0] sm:$0xff] }
 0x15d   :  { %5058 = vmatpush3.bf16.msra.mxu1 %v5055_v32  ;;  %v441_v43 = vmax.f32 %v425_v34, 0.0  ;;  %v442_v28 = vmax.f32 %v426_v37, 0.0  ;;  %v427_v31 = vadd.f32 %v413_v10, %v405_v24  ;;  %v408_v44 = vmul.f32 %v5877_v59, %v391_v0  ;;  %v449_v59 = vld [vmem:[%s7384_s4 + $0x10] sm:$0xff]  ;;  %v452_v0 = vld [vmem:[%s7384_s4 + $0x28] sm:$0xff]  ;;  %v478_v35 = vld [vmem:[%s7384_s4 + $0xf8] sm:$0xff] }
 0x15e   :  { %5060 = vmatprep.subr.bf16.mxu1 %v5059_v33  ;;  %v5071_v45 = vpack.c.bf16 %v440_v39, %v439_v27  ;;  %v428_v46 = vadd.f32 %v413_v10, %v406_v40  ;;  %v445_v52 = vmax.f32 %v429_v12, 0.0  ;;  %v468_v24 = vld [vmem:[%s7384_s4 + $0xa8] sm:$0xff]  ;;  %v469_v12 = vld [vmem:[%s7384_s4 + $0xb0] sm:$0xff]  ;;  %v479_v18 = vld [vmem:[%s7384_s4 + $0x100] sm:$0xff] }
 0x15f   :  { %v5075_v49 = vpack.c.bf16 %v442_v28, %v441_v43  ;;  %v443_v50 = vmax.f32 %v427_v31, 0.0  ;;  %v430_v51 = vadd.f32 %v413_v10, %v408_v44  ;;  %v461_v10 = vld [vmem:[%s7384_s4 + $0x70] sm:$0xff]  ;;  %v476_v36 = vld [vmem:[%s7384_s4 + $0xe8] sm:$0xff]  ;;  %v482_v41 = vld [vmem:[%s7384_s4 + $0x118] sm:$0xff] }
 0x160   :  { %v444_v55 = vmax.f32 %v428_v46, 0.0  ;;  %v477_v17 = vld [vmem:[%s7384_s4 + $0xf0] sm:$0xff]  ;;  %v480_v42 = vld [vmem:[%s7384_s4 + $0x108] sm:$0xff]  ;;  %v740_v22 = vld [vmem:[%s7385_s5 + $0x60] sm:$0xff] }
 0x161   :  { %5062 = vmatpush3.bf16.msra.mxu1 %v5059_v33  ;;  %v446_v56 = vmax.f32 %v430_v51, 0.0  ;;  %v481_v20 = vld [vmem:[%s7384_s4 + $0x110] sm:$0xff]  ;;  %v741_v48 = vld [vmem:[%s7385_s5 + $0x68] sm:$0xff]  ;;  %v743_v23 = vld [vmem:[%s7385_s5 + $0x78] sm:$0xff] }
 0x162   :  { %5064 = vmatprep.subr.bf16.mxu1 %v5063_v26  ;;  %v5079_v58 = vpack.c.bf16 %v444_v55, %v443_v50  ;;  %v5095_v32 = vpack.c.bf16 %v741_v48, %v740_v22  ;;  %v742_v47 = vld [vmem:[%s7385_s5 + $0x70] sm:$0xff]  ;;  %v728_v33 = vld [vmem:[%s7385_s5] sm:$0xff]  ;;  %v731_v43 = vld [vmem:[%s7385_s5 + $0x18] sm:$0xff] }
 0x163   :  { %v5083_v61 = vpack.c.bf16 %v446_v56, %v445_v52  ;;  %v5099_v54 = vpack.c.bf16 %v743_v23, %v742_v47  ;;  %v730_v40 = vld [vmem:[%s7385_s5 + $0x10] sm:$0xff]  ;;  %v733_v46 = vld [vmem:[%s7385_s5 + $0x28] sm:$0xff]  ;;  %v735_v55 = vld [vmem:[%s7385_s5 + $0x38] sm:$0xff] }
 0x164   :  { %5096 = vmatprep.subr.bf16.mxu0 %v5095_v32  ;;  %v5107_v44 = vpack.c.bf16 %v731_v43, %v730_v40  ;;  %v734_v52 = vld [vmem:[%s7385_s5 + $0x30] sm:$0xff]  ;;  %v759_v48 = vld [vmem:[%s7385_s5 + $0xf8] sm:$0xff] }
 0x165   :  { %5066 = vmatpush3.bf16.msra.mxu1 %v5063_v26  ;;  %5098 = vmatpush3.bf16.msra.mxu0 %v5095_v32  ;;  %v729_v26 = vld [vmem:[%s7385_s5 + $0x8] sm:$0xff]  ;;  %v758_v22 = vld [vmem:[%s7385_s5 + $0xf0] sm:$0xff] }
 0x166   :  { %5068 = vmatprep.subr.bf16.mxu1 %v5067_v38  ;;  %5100 = vmatprep.subr.bf16.mxu0 %v5099_v54  ;;  %v5103_v34 = vpack.c.bf16 %v729_v26, %v728_v33  ;;  %v5147_v47 = vpack.c.bf16 %v759_v48, %v758_v22  ;;  %v761_v33 = vld [vmem:[%s7385_s5 + $0x108] sm:$0xff]  ;;  %v792_v22 = vld [vmem:[%s7385_s5 + $0x200] sm:$0xff] }
 0x167   :  { %v793_v48 = vld [vmem:[%s7385_s5 + $0x208] sm:$0xff] }
 0x169   :  { %5070 = vmatpush3.bf16.msra.mxu1 %v5067_v38  ;;  %5102 = vmatpush3.bf16.msra.mxu0 %v5099_v54  ;;  %v760_v54 = vld [vmem:[%s7385_s5 + $0x100] sm:$0xff] }
 0x16a   :  { %5072 = vmatprep.subr.bf16.mxu1 %v5071_v45  ;;  %5104 = vmatprep.subr.bf16.mxu0 %v5103_v34 }
 0x16d   :  { %5074 = vmatpush3.bf16.msra.mxu1 %v5071_v45  ;;  %v732_v45 = vld [vmem:[%s7385_s5 + $0x20] sm:$0xff] }
 0x16e   :  { %5076 = vmatprep.subr.bf16.mxu1 %v5075_v49  ;;  %v5111_v51 = vpack.c.bf16 %v733_v46, %v732_v45 }
 0x171   :  { %5078 = vmatpush3.bf16.msra.mxu1 %v5075_v49 }
 0x172   :  { %5080 = vmatprep.subr.bf16.mxu1 %v5079_v58 }
 0x175   :  { %5082 = vmatpush3.bf16.msra.mxu1 %v5079_v58  ;;  %v5115_v58 = vpack.c.bf16 %v735_v55, %v734_v52 }
 0x176   :  { %5084 = vmatprep.subr.bf16.mxu1 %v5083_v61 }
 0x179   :  { %5086 = vmatpush3.bf16.msra.mxu1 %v5083_v61 }
 0x17c   :  { %4248 = vmatmul.mubr.f32.vlgmr.msra.gmra.mrb[0].mxu1 %v448_v53  ;;  %v744_v53 = vld [vmem:[%s7385_s5 + $0x80] sm:$0xff] }
 0x17d   :  { %4250 = vmatprep.mubr.f32.mxu1 %v449_v59  ;;  %v745_v59 = vld [vmem:[%s7385_s5 + $0x88] sm:$0xff] }
 0x180   :  { %4251 = vmatmul.mubr.f32.gmra.mrb[2].mxu1 %v450_v62 }
 0x181   :  { %4253 = vmatprep.mubr.f32.mxu1 %v451_v63  ;;  %v5119_v63 = vpack.c.bf16 %v745_v59, %v744_v53 }
 0x184   :  { %4254 = vmatmul.mubr.f32.gmra.mrb[4].mxu1 %v452_v0 }
 0x185   :  { %4256 = vmatprep.mubr.f32.mxu1 %v453_v1  ;;  %v746_v1 = vld [vmem:[%s7385_s5 + $0x90] sm:$0xff] }
 0x188   :  { %4257 = vmatmul.mubr.f32.gmra.mrb[6].mxu1 %v454_v2  ;;  %v747_v2 = vld [vmem:[%s7385_s5 + $0x98] sm:$0xff] }
 0x189   :  { %4259 = vmatprep.mubr.f32.mxu1 %v455_v3 }
 0x18c   :  { %4260 = vmatmul.mubr.f32.gmra.mrb[8].mxu1 %v456_v4  ;;  %v5123_v4 = vpack.c.bf16 %v747_v2, %v746_v1  ;;  %v772_v1 = vld [vmem:[%s7385_s5 + $0x160] sm:$0xff]  ;;  %v773_v2 = vld [vmem:[%s7385_s5 + $0x168] sm:$0xff] }
 0x18d   :  { %4262 = vmatprep.mubr.f32.mxu1 %v457_v5 }
 0x190   :  { %4263 = vmatmul.mubr.f32.gmra.mrb[10].mxu1 %v458_v6  ;;  %v748_v6 = vld [vmem:[%s7385_s5 + $0xa0] sm:$0xff] }
 0x191   :  { %4265 = vmatprep.mubr.f32.mxu1 %v459_v7  ;;  %v749_v7 = vld [vmem:[%s7385_s5 + $0xa8] sm:$0xff] }
 0x194   :  { %4266 = vmatmul.mubr.f32.gmra.mrb[12].mxu1 %v460_v8 }
 0x195   :  { %4268 = vmatprep.mubr.f32.mxu1 %v461_v10  ;;  %v5127_v10 = vpack.c.bf16 %v749_v7, %v748_v6  ;;  %v776_v7 = vld [vmem:[%s7385_s5 + $0x180] sm:$0xff] }
 0x198   :  { %4269 = vmatmul.mubr.f32.gmra.mrb[14].mxu1 %v462_v9 }
 0x199   :  { %4271 = vmatprep.mubr.f32.mxu1 %v463_v11  ;;  %v750_v11 = vld [vmem:[%s7385_s5 + $0xb0] sm:$0xff] }
 0x19c   :  { %4272 = vmatmul.mubr.f32.gmra.mrb[16].mxu1 %v464_v60  ;;  %v751_v60 = vld [vmem:[%s7385_s5 + $0xb8] sm:$0xff] }
 0x19d   :  { %4274 = vmatprep.mubr.f32.mxu1 %v465_v21 }
 0x1a0   :  { %4275 = vmatmul.mubr.f32.gmra.mrb[18].mxu1 %v466_v19  ;;  %v5131_v19 = vpack.c.bf16 %v751_v60, %v750_v11  ;;  %v779_v11 = vld [vmem:[%s7385_s5 + $0x198] sm:$0xff] }
 0x1a1   :  { %4277 = vmatprep.mubr.f32.mxu1 %v467_v25 }
 0x1a4   :  { %4278 = vmatmul.mubr.f32.gmra.mrb[20].mxu1 %v468_v24  ;;  %v752_v24 = vld [vmem:[%s7385_s5 + $0xc0] sm:$0xff] }
 0x1a5   :  { %4280 = vmatprep.mubr.f32.mxu1 %v469_v12  ;;  %v753_v12 = vld [vmem:[%s7385_s5 + $0xc8] sm:$0xff] }
 0x1a8   :  { %4281 = vmatmul.mubr.f32.gmra.mrb[22].mxu1 %v470_v30 }
 0x1a9   :  { %4283 = vmatprep.mubr.f32.mxu1 %v471_v13  ;;  %v5135_v13 = vpack.c.bf16 %v753_v12, %v752_v24  ;;  %v782_v24 = vld [vmem:[%s7385_s5 + $0x1b0] sm:$0xff]  ;;  %v783_v12 = vld [vmem:[%s7385_s5 + $0x1b8] sm:$0xff] }
 0x1ac   :  { %4284 = vmatmul.mubr.f32.gmra.mrb[24].mxu1 %v472_v29 }
 0x1ad   :  { %4286 = vmatprep.mubr.f32.mxu1 %v473_v14  ;;  %v754_v14 = vld [vmem:[%s7385_s5 + $0xd0] sm:$0xff] }
 0x1b0   :  { %4287 = vmatmul.mubr.f32.gmra.mrb[26].mxu1 %v474_v15  ;;  %v755_v15 = vld [vmem:[%s7385_s5 + $0xd8] sm:$0xff] }
 0x1b1   :  { %4289 = vmatprep.mubr.f32.mxu1 %v475_v16 }
 0x1b4   :  { %4290 = vmatmul.mubr.f32.gmra.mrb[28].mxu1 %v476_v36  ;;  %v5139_v36 = vpack.c.bf16 %v755_v15, %v754_v14  ;;  %v786_v15 = vld [vmem:[%s7385_s5 + $0x1d0] sm:$0xff] }
 0x1b5   :  { %4292 = vmatprep.mubr.f32.mxu1 %v477_v17 }
 0x1b8   :  { %4293 = vmatmul.mubr.f32.gmra.mrb[30].mxu1 %v478_v35  ;;  %v756_v35 = vld [vmem:[%s7385_s5 + $0xe0] sm:$0xff] }
 0x1b9   :  { %4295 = vmatprep.mubr.f32.mxu1 %v479_v18  ;;  %v757_v18 = vld [vmem:[%s7385_s5 + $0xe8] sm:$0xff] }
 0x1bc   :  { %4296 = vmatmul.mubr.f32.gmra.mrb[32].mxu1 %v480_v42 }
 0x1bd   :  { %4298 = vmatprep.mubr.f32.mxu1 %v481_v20  ;;  %v5143_v20 = vpack.c.bf16 %v757_v18, %v756_v35  ;;  %v789_v35 = vld [vmem:[%s7385_s5 + $0x1e8] sm:$0xff] }
 0x1c0   :  { %4299 = vmatmul.mubr.f32.gmra.mrb[34].mxu1 %v482_v41 }
 0x24f   :  { %v4249_v37 = vpop.f32.mrb[0].mxu1 }
 0x250   :  { %v549_v38 = vpop.f32.mrb[1].mxu1 }
 0x253   :  { %v4252_v27 = vpop.f32.mrb[2].mxu1 }
 0x254   :  { %v559_v39 = vpop.f32.mrb[3].mxu1 }
 0x257   :  { %v4255_v28 = vpop.f32.mrb[4].mxu1 }
 0x258   :  { %v569_v31 = vpop.f32.mrb[5].mxu1 }
 0x259   :  { %4317 = vmatprep.mubr.msk.f32.mxu0 %vm272_vm4, %v569_v31  ;;  %v765_v31 = vld [vmem:[%s7385_s5 + $0x128] sm:$0xff] }
 0x25a   :  { %4318 = vmatmul.mubr.msk.f32.vlgmr.msra.gmra.mrb[16].mxu0 %vm272_vm4, %v4255_v28  ;;  %v764_v28 = vld [vmem:[%s7385_s5 + $0x120] sm:$0xff] }
 0x25b   :  { %5106 = vmatpush3.bf16.msra.mxu0 %v5103_v34  ;;  %v4258_v49 = vpop.f32.mrb[6].mxu1  ;;  %v5151_v34 = vpack.c.bf16 %v761_v33, %v760_v54  ;;  %v5159_v45 = vpack.c.bf16 %v765_v31, %v764_v28  ;;  %v796_v33 = vld [vmem:[%s7385_s5 + $0x220] sm:$0xff] }
 0x25c   :  { %v579_v50 = vpop.f32.mrb[7].mxu1  ;;  %5108 = vmatprep.subr.bf16.mxu0 %v5107_v44 }
 0x25d   :  { %4320 = vmatprep.mubr.msk.f32.mxu0 %vm272_vm4, %v579_v50  ;;  %v767_v50 = vld [vmem:[%s7385_s5 + $0x138] sm:$0xff] }
 0x25e   :  { %4321 = vmatmul.mubr.msk.f32.gmra.mrb[18].mxu0 %vm272_vm4, %v4258_v49  ;;  %v766_v49 = vld [vmem:[%s7385_s5 + $0x130] sm:$0xff] }
 0x25f   :  { %5110 = vmatpush3.bf16.msra.mxu0 %v5107_v44  ;;  %4339 = vmatprep.mubr.msk.f32.mxu0 %vm272_vm4, %v549_v38  ;;  %v4261_v56 = vpop.f32.mrb[8].mxu1  ;;  %v762_v38 = vld [vmem:[%s7385_s5 + $0x110] sm:$0xff]  ;;  %v5163_v52 = vpack.c.bf16 %v767_v50, %v766_v49 }
 0x260   :  { %5112 = vmatprep.subr.bf16.mxu0 %v5111_v51  ;;  %v589_v61 = vpop.f32.mrb[9].mxu1 }
 0x263   :  { %5114 = vmatpush3.bf16.msra.mxu0 %v5111_v51  ;;  %v4264_v62 = vpop.f32.mrb[10].mxu1 }
 0x264   :  { %5116 = vmatprep.subr.bf16.mxu0 %v5115_v58  ;;  %v599_v0 = vpop.f32.mrb[11].mxu1 }
 0x267   :  { %5118 = vmatpush3.bf16.msra.mxu0 %v5115_v58  ;;  %v6135_v3 = vpop.f32.mrb[12].mxu1  ;;  %v769_v58 = vld [vmem:[%s7385_s5 + $0x148] sm:$0xff] }
 0x268   :  { %5120 = vmatprep.subr.bf16.mxu0 %v5119_v63  ;;  %v609_v5 = vpop.f32.mrb[13].mxu1 }
 0x26a   :  { %4340 = vmatmul.mubr.msk.f32.vlgmr.msra.gmra.mrb[16].mxu0 %vm272_vm4, %v4249_v37 }
 0x26b   :  { %4342 = vmatprep.mubr.msk.f32.mxu0 %vm272_vm4, %v559_v39  ;;  %5122 = vmatpush3.bf16.msra.mxu0 %v5119_v63  ;;  %v6145_v8 = vpop.f32.mrb[14].mxu1  ;;  %v771_v63 = vld [vmem:[%s7385_s5 + $0x158] sm:$0xff] }
 0x26c   :  { %5124 = vmatprep.subr.bf16.mxu0 %v5123_v4  ;;  %v619_v9 = vpop.f32.mrb[15].mxu1 }
 0x26e   :  { %4343 = vmatmul.mubr.msk.f32.gmra.mrb[18].mxu0 %vm272_vm4, %v4252_v27  ;;  %v763_v27 = vld [vmem:[%s7385_s5 + $0x118] sm:$0xff] }
 0x26f   :  { %5126 = vmatpush3.bf16.msra.mxu0 %v5123_v4  ;;  %4361 = vmatprep.mubr.msk.f32.mxu0 %vm272_vm4, %v589_v61  ;;  %v6155_v21 = vpop.f32.mrb[16].mxu1  ;;  %v5155_v40 = vpack.c.bf16 %v763_v27, %v762_v38  ;;  %v774_v4 = vld [vmem:[%s7385_s5 + $0x170] sm:$0xff]  ;;  %v799_v38 = vld [vmem:[%s7385_s5 + $0x238] sm:$0xff] }
 0x270   :  { %5128 = vmatprep.subr.bf16.mxu0 %v5127_v10  ;;  %v629_v25 = vpop.f32.mrb[17].mxu1 }
 0x273   :  { %5130 = vmatpush3.bf16.msra.mxu0 %v5127_v10  ;;  %v6163_v30 = vpop.f32.mrb[18].mxu1 }
 0x274   :  { %5132 = vmatprep.subr.bf16.mxu0 %v5131_v19  ;;  %v6165_v29 = vpop.f32.mrb[19].mxu1 }
 0x277   :  { %5134 = vmatpush3.bf16.msra.mxu0 %v5131_v19  ;;  %v6173_v16 = vpop.f32.mrb[20].mxu1  ;;  %v781_v19 = vld [vmem:[%s7385_s5 + $0x1a8] sm:$0xff] }
 0x278   :  { %5136 = vmatprep.subr.bf16.mxu0 %v5135_v13  ;;  %v6175_v17 = vpop.f32.mrb[21].mxu1 }
 0x27a   :  { %4362 = vmatmul.mubr.msk.f32.vlgmr.msra.gmra.mrb[16].mxu0 %vm272_vm4, %v4261_v56  ;;  %v768_v56 = vld [vmem:[%s7385_s5 + $0x140] sm:$0xff] }
 0x27b   :  { %5138 = vmatpush3.bf16.msra.mxu0 %v5135_v13  ;;  %4364 = vmatprep.mubr.msk.f32.mxu0 %vm272_vm4, %v599_v0  ;;  %v6185_v42 = vpop.f32.mrb[22].mxu1  ;;  %v5167_v53 = vpack.c.bf16 %v769_v58, %v768_v56  ;;  %v784_v13 = vld [vmem:[%s7385_s5 + $0x1c0] sm:$0xff] }
 0x27c   :  { %5140 = vmatprep.subr.bf16.mxu0 %v5139_v36  ;;  %v6187_v41 = vpop.f32.mrb[23].mxu1 }
 0x27e   :  { %4365 = vmatmul.mubr.msk.f32.gmra.mrb[18].mxu0 %vm272_vm4, %v4264_v62  ;;  %v770_v62 = vld [vmem:[%s7385_s5 + $0x150] sm:$0xff] }
 0x27f   :  { %5142 = vmatpush3.bf16.msra.mxu0 %v5139_v36  ;;  %4383 = vmatprep.mubr.msk.f32.mxu0 %vm272_vm4, %v609_v5  ;;  %v6197_v32 = vpop.f32.mrb[24].mxu1  ;;  %v5171_v0 = vpack.c.bf16 %v771_v63, %v770_v62  ;;  %v775_v5 = vld [vmem:[%s7385_s5 + $0x178] sm:$0xff] }
 0x280   :  { %5144 = vmatprep.subr.bf16.mxu0 %v5143_v20  ;;  %v6199_v23 = vpop.f32.mrb[25].mxu1  ;;  %v5179_v6 = vpack.c.bf16 %v775_v5, %v774_v4 }
 0x283   :  { %5146 = vmatpush3.bf16.msra.mxu0 %v5143_v20  ;;  %v6207_v26 = vpop.f32.mrb[26].mxu1  ;;  %v791_v20 = vld [vmem:[%s7385_s5 + $0x1f8] sm:$0xff] }
 0x284   :  { %5148 = vmatprep.subr.bf16.mxu0 %v5147_v47  ;;  %v6209_v37 = vpop.f32.mrb[27].mxu1 }
 0x287   :  { %5150 = vmatpush3.bf16.msra.mxu0 %v5147_v47  ;;  %v6217_v39 = vpop.f32.mrb[28].mxu1  ;;  %v794_v47 = vld [vmem:[%s7385_s5 + $0x210] sm:$0xff] }
 0x288   :  { %5152 = vmatprep.subr.bf16.mxu0 %v5151_v34  ;;  %v6219_v43 = vpop.f32.mrb[29].mxu1 }
 0x28a   :  { %4384 = vmatmul.mubr.msk.f32.vlgmr.msra.gmra.mrb[16].mxu0 %vm272_vm4, %v6135_v3  ;;  %v5175_v3 = vpack.c.bf16 %v773_v2, %v772_v1 }
 0x28b   :  { %5154 = vmatpush3.bf16.msra.mxu0 %v5151_v34  ;;  %4386 = vmatprep.mubr.msk.f32.mxu0 %vm272_vm4, %v619_v9  ;;  %v6230_v44 = vpop.f32.mrb[30].mxu1  ;;  %v778_v9 = vld [vmem:[%s7385_s5 + $0x190] sm:$0xff] }
 0x28c   :  { %5156 = vmatprep.subr.bf16.mxu0 %v5155_v40  ;;  %v6232_v46 = vpop.f32.mrb[31].mxu1  ;;  %v5187_v60 = vpack.c.bf16 %v779_v11, %v778_v9 }
 0x28e   :  { %4387 = vmatmul.mubr.msk.f32.gmra.mrb[18].mxu0 %vm272_vm4, %v6145_v8  ;;  %v777_v8 = vld [vmem:[%s7385_s5 + $0x188] sm:$0xff] }
 0x28f   :  { %5158 = vmatpush3.bf16.msra.mxu0 %v5155_v40  ;;  %4405 = vmatprep.mubr.msk.f32.mxu0 %vm272_vm4, %v629_v25  ;;  %v6243_v51 = vpop.f32.mrb[32].mxu1  ;;  %v5183_v10 = vpack.c.bf16 %v777_v8, %v776_v7  ;;  %v5664_v40 = vmov 0.0  }
 0x290   :  { %5160 = vmatprep.subr.bf16.mxu0 %v5159_v45  ;;  %v6245_v55 = vpop.f32.mrb[33].mxu1  ;;  %4507 = vmatprep.mubr.msk.f32.mxu1 %vm5663_vm5, %v5664_v40 }
 0x293   :  { %5162 = vmatpush3.bf16.msra.mxu0 %v5159_v45  ;;  %v6253_v61 = vpop.f32.mrb[34].mxu1 }
 0x294   :  { %5164 = vmatprep.subr.bf16.mxu0 %v5163_v52  ;;  %v6255_v59 = vpop.f32.mrb[35].mxu1 }
 0x297   :  { %5166 = vmatpush3.bf16.msra.mxu0 %v5163_v52 }
 0x298   :  { %5168 = vmatprep.subr.bf16.mxu0 %v5167_v53 }
 0x29a   :  { %4406 = vmatmul.mubr.msk.f32.vlgmr.msra.gmra.mrb[16].mxu0 %vm272_vm4, %v6155_v21  ;;  %v780_v21 = vld [vmem:[%s7385_s5 + $0x1a0] sm:$0xff] }
 0x29b   :  { %5170 = vmatpush3.bf16.msra.mxu0 %v5167_v53  ;;  %4408 = vmatprep.mubr.msk.f32.mxu0 %vm272_vm4, %v6165_v29  ;;  %v5191_v25 = vpack.c.bf16 %v781_v19, %v780_v21  ;;  %v785_v29 = vld [vmem:[%s7385_s5 + $0x1c8] sm:$0xff] }
 0x29c   :  { %5172 = vmatprep.subr.bf16.mxu0 %v5171_v0  ;;  %v5199_v14 = vpack.c.bf16 %v785_v29, %v784_v13 }
 0x29e   :  { %4409 = vmatmul.mubr.msk.f32.gmra.mrb[18].mxu0 %vm272_vm4, %v6163_v30  ;;  %v5195_v30 = vpack.c.bf16 %v783_v12, %v782_v24 }
 0x29f   :  { %5174 = vmatpush3.bf16.msra.mxu0 %v5171_v0  ;;  %4427 = vmatprep.mubr.msk.f32.mxu0 %vm272_vm4, %v6175_v17  ;;  %v788_v17 = vld [vmem:[%s7385_s5 + $0x1e0] sm:$0xff] }
 0x2a0   :  { %5176 = vmatprep.subr.bf16.mxu0 %v5175_v3  ;;  %v5207_v18 = vpack.c.bf16 %v789_v35, %v788_v17  ;;  %v1702_v35 = vld [vmem:[%s7387_s7] sm:$0x1] }
 0x2a3   :  { %5178 = vmatpush3.bf16.msra.mxu0 %v5175_v3 }
 0x2a4   :  { %5180 = vmatprep.subr.bf16.mxu0 %v5179_v6 }
 0x2a7   :  { %5182 = vmatpush3.bf16.msra.mxu0 %v5179_v6 }
 0x2a8   :  { %5184 = vmatprep.subr.bf16.mxu0 %v5183_v10 }
 0x2aa   :  { %4428 = vmatmul.mubr.msk.f32.vlgmr.msra.gmra.mrb[16].mxu0 %vm272_vm4, %v6173_v16  ;;  %v787_v16 = vld [vmem:[%s7385_s5 + $0x1d8] sm:$0xff] }
 0x2ab   :  { %5186 = vmatpush3.bf16.msra.mxu0 %v5183_v10  ;;  %4430 = vmatprep.mubr.msk.f32.mxu0 %vm272_vm4, %v6187_v41  ;;  %v5203_v36 = vpack.c.bf16 %v787_v16, %v786_v15  ;;  %v1701_v16 = vld [vmem:[%s7386_s6] sm:$0x1] }
 0x2ac   :  { %5188 = vmatprep.subr.bf16.mxu0 %v5187_v60 }
 0x2ae   :  { %4431 = vmatmul.mubr.msk.f32.gmra.mrb[18].mxu0 %vm272_vm4, %v6185_v42  ;;  %v790_v42 = vld [vmem:[%s7385_s5 + $0x1f0] sm:$0xff] }
 0x2af   :  { %5190 = vmatpush3.bf16.msra.mxu0 %v5187_v60  ;;  %4449 = vmatprep.mubr.msk.f32.mxu0 %vm272_vm4, %v6199_v23  ;;  %v5211_v41 = vpack.c.bf16 %v791_v20, %v790_v42  ;;  %v795_v23 = vld [vmem:[%s7385_s5 + $0x218] sm:$0xff] }
 0x2b0   :  { %5192 = vmatprep.subr.bf16.mxu0 %v5191_v25  ;;  %v5219_v54 = vpack.c.bf16 %v795_v23, %v794_v47 }
 0x2b3   :  { %5194 = vmatpush3.bf16.msra.mxu0 %v5191_v25 }
 0x2b4   :  { %5196 = vmatprep.subr.bf16.mxu0 %v5195_v30 }
 0x2b7   :  { %5198 = vmatpush3.bf16.msra.mxu0 %v5195_v30 }
 0x2b8   :  { %5200 = vmatprep.subr.bf16.mxu0 %v5199_v14 }
 0x2ba   :  { %4450 = vmatmul.mubr.msk.f32.vlgmr.msra.gmra.mrb[16].mxu0 %vm272_vm4, %v6197_v32  ;;  %v5215_v32 = vpack.c.bf16 %v793_v48, %v792_v22 }
 0x2bb   :  { %5202 = vmatpush3.bf16.msra.mxu0 %v5199_v14  ;;  %4452 = vmatprep.mubr.msk.f32.mxu0 %vm272_vm4, %v6209_v37  ;;  %v798_v37 = vld [vmem:[%s7385_s5 + $0x230] sm:$0xff] }
 0x2bc   :  { %5204 = vmatprep.subr.bf16.mxu0 %v5203_v36  ;;  %v5227_v27 = vpack.c.bf16 %v799_v38, %v798_v37 }
 0x2be   :  { %4453 = vmatmul.mubr.msk.f32.gmra.mrb[18].mxu0 %vm272_vm4, %v6207_v26  ;;  %v797_v26 = vld [vmem:[%s7385_s5 + $0x228] sm:$0xff]  ;;  %s5665_s5 = smov [#allocation2]  }
 0x2bf   :  { %5206 = vmatpush3.bf16.msra.mxu0 %v5203_v36  ;;  %4471 = vmatprep.mubr.msk.f32.mxu0 %vm272_vm4, %v6219_v43  ;;  %v5223_v34 = vpack.c.bf16 %v797_v26, %v796_v33  ;;  %s3664_s3 = sshll.u32 %s5665_s5, 4  ;;  %s3665_s3 = int_to_ptr.vmem [resolvable:$true] %s3664_s3 }
 0x2c0   :  { %5208 = vmatprep.subr.bf16.mxu0 %v5207_v18  ;;  %p5642_p1 = scmp.lt.s32.totalorder %s3665_s3, %s3665_s3 }
 0x2c3   :  { %5210 = vmatpush3.bf16.msra.mxu0 %v5207_v18 }
 0x2c4   :  { %5212 = vmatprep.subr.bf16.mxu0 %v5211_v41 }
 0x2c7   :  { %5214 = vmatpush3.bf16.msra.mxu0 %v5211_v41 }
 0x2c8   :  { %5216 = vmatprep.subr.bf16.mxu0 %v5215_v32 }
 0x2ca   :  { %4472 = vmatmul.mubr.msk.f32.vlgmr.msra.gmra.mrb[16].mxu0 %vm272_vm4, %v6217_v39  ;;  %v5662_v39 = vmov 0.0|0.0  }
 0x2cb   :  { %5218 = vmatpush3.bf16.msra.mxu0 %v5215_v32  ;;  %4474 = vmatprep.mubr.msk.f32.mxu0 %vm272_vm4, %v6232_v46 }
 0x2cc   :  { %5220 = vmatprep.subr.bf16.mxu0 %v5219_v54  ;;  %5231 = vmatprep.subr.bf16.mxu1 %v5662_v39 }
 0x2ce   :  { %4475 = vmatmul.mubr.msk.f32.gmra.mrb[18].mxu0 %vm272_vm4, %v6230_v44 }
 0x2cf   :  { %5222 = vmatpush3.bf16.msra.mxu0 %v5219_v54  ;;  %4493 = vmatprep.mubr.msk.f32.mxu0 %vm272_vm4, %v6245_v55 }
 0x2d0   :  { %5224 = vmatprep.subr.bf16.mxu0 %v5223_v34 }
 0x2d3   :  { %5226 = vmatpush3.bf16.msra.mxu0 %v5223_v34 }
 0x2d4   :  { %5228 = vmatprep.subr.bf16.mxu0 %v5227_v27 }
 0x2d7   :  { %5230 = vmatpush3.bf16.msra.mxu0 %v5227_v27 }
 0x2d8   :  { %4705 = vmatprep.subr.mxu0 %v5664_v40 }
 0x2da   :  { %4494 = vmatmul.mubr.msk.f32.vlgmr.msra.gmra.mrb[16].mxu0 %vm272_vm4, %v6243_v51 }
 0x2db   :  { %4496 = vmatprep.mubr.msk.f32.mxu0 %vm272_vm4, %v6255_v59 }
 0x2de   :  { %4497 = vmatmul.mubr.msk.f32.gmra.mrb[18].mxu0 %vm272_vm4, %v6253_v61 }
 0x2df   :  { %4707 = vmatprep.mubr.msk.f32.mxu0 %vm5663_vm5, %v5664_v40 }
 0x3ad   :  { %v4495_v43 = vpop.f32.mrb[16].mxu0 }
 0x3ae   :  { %v1704_v28 = vsel %vm272_vm4, %v4495_v43, 0.0  ;;  %v1678_v31 = vpop.f32.mrb[17].mxu0 }
 0x3af   :  { %v1703_v44 = vsel %vm272_vm4, %v1678_v31, 0.0 }
 0x3b0   :  { %v1705_v45 = vadd.f32 %v1704_v28, %v1703_v44 }
 0x3b1   :  { %v4498_v46 = vpop.f32.mrb[18].mxu0 }
 0x3b2   :  { %v1688_v49 = vpop.f32.mrb[19].mxu0  ;;  %v1708_v52 = vsel %vm272_vm4, %v4498_v46, 0.0 }
 0x3b3   :  { %v1706_v50 = vsel %vm272_vm4, %v1688_v49, 0.0 }
 0x3b4   :  { %v1707_v51 = vadd.f32 %v1706_v50, %v1705_v45  ;;  %v1769_v45 = vld [vmem:[%s7388_s8] sm:$0xff]  ;;  %v1927_v50 = vld [vmem:[%s7389_s9 + $0x58] sm:$0xff] }
 0x3b6   :  { %v1709_v55 = vadd.f32 %v1708_v52, %v1707_v51  ;;  %v1770_v51 = vld [vmem:[%s7388_s8 + $0x8] sm:$0xff] }
 0x3b8   :  { %v1710_v56 = vrot.slane %v1709_v55, 4 }
 0x3ba   :  { %v1711_v58 = vadd.f32 %v1710_v56, %v1709_v55  ;;  %v1928_v55 = vld [vmem:[%s7389_s9 + $0x60] sm:$0xff]  ;;  %v1929_v56 = vld [vmem:[%s7389_s9 + $0x68] sm:$0xff] }
 0x3bc   :  { %v1712_v61 = vrot.slane %v1711_v58, 2 }
 0x3be   :  { %v1713_v53 = vadd.f32 %v1712_v61, %v1711_v58  ;;  %v1771_v58 = vld [vmem:[%s7388_s8 + $0x10] sm:$0xff]  ;;  %v5244_v61 = vpack.c.bf16 %v1929_v56, %v1928_v55  ;;  %v1944_v55 = vld [vmem:[%s7389_s9 + $0xe0] sm:$0xff]  ;;  %v1945_v56 = vld [vmem:[%s7389_s9 + $0xe8] sm:$0xff] }
 0x3c0   :  { %v1714_v59 = vrot.slane %v1713_v53, 1 }
 0x3c2   :  { %v1715_v62 = vadd.f32 %v1714_v59, %v1713_v53  ;;  %v1930_v53 = vld [vmem:[%s7389_s9 + $0x70] sm:$0xff]  ;;  %v1931_v59 = vld [vmem:[%s7389_s9 + $0x78] sm:$0xff] }
 0x3c4   :  { %v1717_v63 = vmul.f32 0.03125, %v1715_v62  ;;  %v1772_v62 = vld [vmem:[%s7388_s8 + $0x18] sm:$0xff] }
 0x3c6   :  { %v1718_v0 = vsub.f32 %v1678_v31, %v1717_v63  ;;  %v1719_v1 = vsub.f32 %v4495_v43, %v1717_v63  ;;  %v1720_v2 = vsub.f32 %v1688_v49, %v1717_v63  ;;  %v1721_v3 = vsub.f32 %v4498_v46, %v1717_v63 }
 0x3c8   :  { %v1722_v4 = vmul.f32 %v1718_v0, %v1718_v0  ;;  %v1723_v5 = vmul.f32 %v1719_v1, %v1719_v1  ;;  %v1724_v6 = vmul.f32 %v1720_v2, %v1720_v2  ;;  %v1725_v7 = vmul.f32 %v1721_v3, %v1721_v3  ;;  %v1773_v0 = vld [vmem:[%s7388_s8 + $0x20] sm:$0xff]  ;;  %v1774_v1 = vld [vmem:[%s7388_s8 + $0x28] sm:$0xff]  ;;  %v1775_v2 = vld [vmem:[%s7388_s8 + $0x30] sm:$0xff] }
 0x3c9   :  { %v1776_v3 = vld [vmem:[%s7388_s8 + $0x38] sm:$0xff] }
 0x3ca   :  { %v1726_v8 = vsel %vm272_vm4, %v1722_v4, 0.0  ;;  %v1727_v10 = vsel %vm272_vm4, %v1723_v5, 0.0  ;;  %v1729_v11 = vsel %vm272_vm4, %v1724_v6, 0.0  ;;  %v1731_v21 = vsel %vm272_vm4, %v1725_v7, 0.0  ;;  %v1777_v4 = vld [vmem:[%s7388_s8 + $0x40] sm:$0xff]  ;;  %v1917_v6 = vld [vmem:[%s7389_s9 + $0x8] sm:$0xff] }
 0x3cb   :  { %v1728_v9 = vadd.f32 %v1727_v10, %v1726_v8  ;;  %v1916_v5 = vld [vmem:[%s7389_s9] sm:$0xff] }
 0x3cc   :  { %v5250_v10 = vpack.c.bf16 %v1917_v6, %v1916_v5  ;;  %v1953_v5 = vld [vmem:[%s7389_s9 + $0x128] sm:$0xff] }
 0x3cd   :  { %v1730_v60 = vadd.f32 %v1729_v11, %v1728_v9  ;;  %v1918_v9 = vld [vmem:[%s7389_s9 + $0x10] sm:$0xff]  ;;  %v1919_v11 = vld [vmem:[%s7389_s9 + $0x18] sm:$0xff] }
 0x3cf   :  { %v1732_v19 = vadd.f32 %v1731_v21, %v1730_v60 }
 0x3d1   :  { %v1733_v25 = vrot.slane %v1732_v19, 4 }
 0x3d3   :  { %v1734_v24 = vadd.f32 %v1733_v25, %v1732_v19  ;;  %v5253_v19 = vpack.c.bf16 %v1919_v11, %v1918_v9  ;;  %v1920_v25 = vld [vmem:[%s7389_s9 + $0x20] sm:$0xff]  ;;  %v1957_v11 = vld [vmem:[%s7389_s9 + $0x148] sm:$0xff] }
 0x3d4   :  { %v1956_v9 = vld [vmem:[%s7389_s9 + $0x140] sm:$0xff] }
 0x3d5   :  { %v1735_v12 = vrot.slane %v1734_v24, 2 }
 0x3d7   :  { %v1736_v30 = vadd.f32 %v1735_v12, %v1734_v24  ;;  %v1921_v24 = vld [vmem:[%s7389_s9 + $0x28] sm:$0xff] }
 0x3d9   :  { %v1737_v13 = vrot.slane %v1736_v30, 1 }
 0x3db   :  { %v1738_v29 = vadd.f32 %v1737_v13, %v1736_v30  ;;  %v5256_v13 = vpack.c.bf16 %v1921_v24, %v1920_v25  ;;  %v1960_v24 = vld [vmem:[%s7389_s9 + $0x160] sm:$0xff] }
 0x3dd   :  { %v1739_v14 = vmul.f32 0.03125, %v1738_v29  ;;  %v1922_v29 = vld [vmem:[%s7389_s9 + $0x30] sm:$0xff] }
 0x3df   :  { %v1740_v15 = vadd.f32 1e-05, %v1739_v14  ;;  %v1923_v14 = vld [vmem:[%s7389_s9 + $0x38] sm:$0xff] }
 0x3e1   :  { %5631 = vrsqrt.f32 %v1740_v15 }
 0x3eb   :  { %v5632_v36 = vpop.eup %5631 }
 0x3ec   :  { %v1742_v17 = vmul.f32 %v5632_v36, %v1701_v16  ;;  %v5259_v36 = vpack.c.bf16 %v1923_v14, %v1922_v29  ;;  %v1963_v29 = vld [vmem:[%s7389_s9 + $0x178] sm:$0xff] }
 0x3ee   :  { %v1743_v18 = vmul.f32 %v1742_v17, %v1717_v63  ;;  %v1749_v42 = vrot.slane %v1742_v17, %v5953_v57  ;;  %v5247_v63 = vpack.c.bf16 %v1931_v59, %v1930_v53  ;;  %v1932_v17 = vld [vmem:[%s7389_s9 + $0x80] sm:$0xff]  ;;  %v1947_v53 = vld [vmem:[%s7389_s9 + $0xf8] sm:$0xff] }
 0x3f0   :  { %v1744_v20 = vsub.f32 %v1702_v35, %v1743_v18  ;;  %v1753_v41 = vmul.f32 %v1749_v42, %v1688_v49  ;;  %v1751_v22 = vmul.f32 %v1749_v42, %v1678_v31  ;;  %v1752_v48 = vmul.f32 %v4495_v43, %v1749_v42  ;;  %v1924_v43 = vld [vmem:[%s7389_s9 + $0x40] sm:$0xff]  ;;  %v1925_v31 = vld [vmem:[%s7389_s9 + $0x48] sm:$0xff]  ;;  %v1926_v49 = vld [vmem:[%s7389_s9 + $0x50] sm:$0xff] }
 0x3f1   :  { %v1754_v32 = vmul.f32 %v4498_v46, %v1749_v42  ;;  %v5238_v46 = vpack.c.bf16 %v1925_v31, %v1924_v43  ;;  %v5241_v52 = vpack.c.bf16 %v1927_v50, %v1926_v49  ;;  %v1933_v35 = vld [vmem:[%s7389_s9 + $0x88] sm:$0xff]  ;;  %v1940_v43 = vld [vmem:[%s7389_s9 + $0xc0] sm:$0xff]  ;;  %v1942_v50 = vld [vmem:[%s7389_s9 + $0xd0] sm:$0xff] }
 0x3f2   :  { %v1759_v47 = vrot.slane %v1744_v20, %v5953_v57  ;;  %v5262_v20 = vpack.c.bf16 %v1933_v35, %v1932_v17  ;;  %v1941_v31 = vld [vmem:[%s7389_s9 + $0xc8] sm:$0xff]  ;;  %v1966_v17 = vld [vmem:[%s7389_s9 + $0x190] sm:$0xff]  ;;  %v1967_v35 = vld [vmem:[%s7389_s9 + $0x198] sm:$0xff] }
 0x3f3   :  { %v5274_v49 = vpack.c.bf16 %v1941_v31, %v1940_v43  ;;  %v1979_v43 = vld [vmem:[%s7389_s9 + $0x1f8] sm:$0xff] }
 0x3f4   :  { %v1763_v23 = vadd.f32 %v1759_v47, %v1753_v41  ;;  %v1761_v54 = vadd.f32 %v1759_v47, %v1751_v22  ;;  %v1762_v33 = vadd.f32 %v1759_v47, %v1752_v48  ;;  %v1764_v26 = vadd.f32 %v1759_v47, %v1754_v32  ;;  %v1934_v41 = vld [vmem:[%s7389_s9 + $0x90] sm:$0xff]  ;;  %v1935_v22 = vld [vmem:[%s7389_s9 + $0x98] sm:$0xff] }
 0x3f5   :  { %v5265_v47 = vpack.c.bf16 %v1935_v22, %v1934_v41  ;;  %v1970_v22 = vld [vmem:[%s7389_s9 + $0x1b0] sm:$0xff] }
 0x3f6   :  { %v1767_v34 = vmax.f32 %v1763_v23, 0.0  ;;  %v1765_v37 = vmax.f32 %v1761_v54, 0.0  ;;  %v1766_v38 = vmax.f32 %v1762_v33, 0.0  ;;  %v1768_v27 = vmax.f32 %v1764_v26, 0.0  ;;  %v1936_v23 = vld [vmem:[%s7389_s9 + $0xa0] sm:$0xff]  ;;  %v1937_v54 = vld [vmem:[%s7389_s9 + $0xa8] sm:$0xff] }
 0x3f8   :  { %v5232_v28 = vpack.c.bf16 %v1766_v38, %v1765_v37  ;;  %v5235_v44 = vpack.c.bf16 %v1768_v27, %v1767_v34  ;;  %v5268_v34 = vpack.c.bf16 %v1937_v54, %v1936_v23  ;;  %v1938_v37 = vld [vmem:[%s7389_s9 + $0xb0] sm:$0xff]  ;;  %v1939_v38 = vld [vmem:[%s7389_s9 + $0xb8] sm:$0xff]  ;;  %v1973_v23 = vld [vmem:[%s7389_s9 + $0x1c8] sm:$0xff] }
 0x3fa   :  { %5233 = vmatpush3.bf16.msra.mxu1 %v5232_v28 }
 0x3fb   :  { %5234 = vmatprep.subr.bf16.mxu1 %v5662_v39 }
 0x3fe   :  { %5236 = vmatpush3.bf16.msra.mxu1 %v5235_v44  ;;  %v5271_v44 = vpack.c.bf16 %v1939_v38, %v1938_v37  ;;  %v1976_v38 = vld [vmem:[%s7389_s9 + $0x1e0] sm:$0xff] }
 0x3ff   :  { %5237 = vmatprep.subr.bf16.mxu1 %v5662_v39 }
 0x401   :  { %4508 = vmatmul.mubr.msk.f32.vlgmr.msra.gmra.mrb[36].mxu1 %vm1778_vm6, %v1769_v45 }
 0x402   :  { %4510 = vmatprep.mubr.msk.f32.mxu1 %vm5663_vm5, %v5664_v40  ;;  %5239 = vmatpush3.bf16.msra.mxu1 %v5238_v46 }
 0x403   :  { %5240 = vmatprep.subr.bf16.mxu1 %v5662_v39 }
 0x405   :  { %4511 = vmatmul.mubr.msk.f32.gmra.mrb[38].mxu1 %vm1778_vm6, %v1770_v51  ;;  %v1943_v51 = vld [vmem:[%s7389_s9 + $0xd8] sm:$0xff] }
 0x406   :  { %4513 = vmatprep.mubr.msk.f32.mxu1 %vm5663_vm5, %v5664_v40  ;;  %5242 = vmatpush3.bf16.msra.mxu1 %v5241_v52  ;;  %v5277_v52 = vpack.c.bf16 %v1943_v51, %v1942_v50  ;;  %v1982_v51 = vld [vmem:[%s7389_s9 + $0x210] sm:$0xff] }
 0x407   :  { %5243 = vmatprep.subr.bf16.mxu1 %v5662_v39 }
 0x409   :  { %4514 = vmatmul.mubr.msk.f32.gmra.mrb[40].mxu1 %vm1778_vm6, %v1771_v58  ;;  %v5280_v58 = vpack.c.bf16 %v1945_v56, %v1944_v55  ;;  %v1984_v56 = vld [vmem:[%s7389_s9 + $0x220] sm:$0xff] }
 0x40a   :  { %4516 = vmatprep.mubr.msk.f32.mxu1 %vm5663_vm5, %v5664_v40  ;;  %5245 = vmatpush3.bf16.msra.mxu1 %v5244_v61  ;;  %v1946_v61 = vld [vmem:[%s7389_s9 + $0xf0] sm:$0xff] }
 0x40b   :  { %5246 = vmatprep.subr.bf16.mxu1 %v5662_v39  ;;  %v5283_v59 = vpack.c.bf16 %v1947_v53, %v1946_v61  ;;  %v1987_v53 = vld [vmem:[%s7389_s9 + $0x238] sm:$0xff] }
 0x40d   :  { %4517 = vmatmul.mubr.msk.f32.gmra.mrb[42].mxu1 %vm1778_vm6, %v1772_v62  ;;  %v1948_v62 = vld [vmem:[%s7389_s9 + $0x100] sm:$0xff] }
 0x40e   :  { %4519 = vmatprep.mubr.msk.f32.mxu1 %vm5663_vm5, %v5664_v40  ;;  %5248 = vmatpush3.bf16.msra.mxu1 %v5247_v63  ;;  %v1949_v63 = vld [vmem:[%s7389_s9 + $0x108] sm:$0xff] }
 0x40f   :  { %5249 = vmatprep.subr.bf16.mxu1 %v5662_v39 }
 0x411   :  { %4520 = vmatmul.mubr.msk.f32.gmra.mrb[44].mxu1 %vm1778_vm6, %v1773_v0  ;;  %v5286_v0 = vpack.c.bf16 %v1949_v63, %v1948_v62  ;;  %v2854_v62 = vld [vmem:[%s7393_s13 + $0x80] sm:$0xff]  ;;  %v2855_v63 = vld [vmem:[%s7393_s13 + $0x88] sm:$0xff] }
 0x412   :  { %4522 = vmatprep.mubr.msk.f32.mxu1 %vm5663_vm5, %v5664_v40 }
 0x415   :  { %4523 = vmatmul.mubr.msk.f32.gmra.mrb[46].mxu1 %vm1778_vm6, %v1774_v1  ;;  %v1950_v1 = vld [vmem:[%s7389_s9 + $0x110] sm:$0xff] }
 0x416   :  { %4525 = vmatprep.mubr.msk.f32.mxu1 %vm5663_vm5, %v5664_v40 }
 0x419   :  { %4526 = vmatmul.mubr.msk.f32.gmra.mrb[48].mxu1 %vm1778_vm6, %v1775_v2  ;;  %v1951_v2 = vld [vmem:[%s7389_s9 + $0x118] sm:$0xff] }
 0x41a   :  { %4528 = vmatprep.mubr.msk.f32.mxu1 %vm5663_vm5, %v5664_v40 }
 0x41d   :  { %4529 = vmatmul.mubr.msk.f32.gmra.mrb[50].mxu1 %vm1778_vm6, %v1776_v3  ;;  %v5289_v3 = vpack.c.bf16 %v1951_v2, %v1950_v1  ;;  %v5346_v1 = vpack.c.bf16 %v2855_v63, %v2854_v62  ;;  %v2890_v63 = vld [vmem:[%s7393_s13 + $0x1a0] sm:$0xff] }
 0x41e   :  { %4531 = vmatprep.mubr.msk.f32.mxu1 %vm5663_vm5, %v5664_v40 }
 0x421   :  { %4532 = vmatmul.mubr.msk.f32.gmra.mrb[52].mxu1 %vm1778_vm6, %v1777_v4  ;;  %v1952_v4 = vld [vmem:[%s7389_s9 + $0x120] sm:$0xff] }
 0x422   :  { %4550 = vmatprep.mubr.msk.f32.mxu1 %vm5663_vm5, %v5664_v40  ;;  %v5292_v6 = vpack.c.bf16 %v1953_v5, %v1952_v4  ;;  %v2859_v4 = vld [vmem:[%s7393_s13 + $0xa8] sm:$0xff] }
 0x4d4   :  { %v1872_v7 = vpop.f32.mrb[36].mxu1 }
 0x4d5   :  { %v4509_v8 = vpop.f32.mrb[37].mxu1 }
 0x4d6   :  { %v1955_v8 = vld [vmem:[%s7389_s9 + $0x138] sm:$0xff] }
 0x4d8   :  { %v1877_v60 = vpop.f32.mrb[38].mxu1 }
 0x4d9   :  { %4551 = vmatmul.mubr.msk.f32.vlgmr.msra.gmra.mrb[54].mxu1 %vm272_vm4, %v1877_v60  ;;  %v4512_v21 = vpop.f32.mrb[39].mxu1  ;;  %v5298_v60 = vpack.c.bf16 %v1957_v11, %v1956_v9  ;;  %v2863_v9 = vld [vmem:[%s7393_s13 + $0xc8] sm:$0xff] }
 0x4da   :  { %5251 = vmatpush3.bf16.msra.mxu1 %v5250_v10  ;;  %4569 = vmatprep.mubr.msk.f32.mxu1 %vm5663_vm5, %v5664_v40  ;;  %v1958_v21 = vld [vmem:[%s7389_s9 + $0x150] sm:$0xff] }
 0x4db   :  { %5252 = vmatprep.subr.bf16.mxu1 %v5662_v39 }
 0x4dc   :  { %v1882_v12 = vpop.f32.mrb[40].mxu1 }
 0x4dd   :  { %v4515_v30 = vpop.f32.mrb[41].mxu1 }
 0x4de   :  { %5254 = vmatpush3.bf16.msra.mxu1 %v5253_v19  ;;  %v1959_v19 = vld [vmem:[%s7389_s9 + $0x158] sm:$0xff] }
 0x4df   :  { %5255 = vmatprep.subr.bf16.mxu1 %v5662_v39  ;;  %v5301_v25 = vpack.c.bf16 %v1959_v19, %v1958_v21  ;;  %v2865_v21 = vld [vmem:[%s7393_s13 + $0xd8] sm:$0xff] }
 0x4e0   :  { %v6520_v15 = vpop.f32.mrb[42].mxu1 }
 0x4e1   :  { %v4518_v16 = vpop.f32.mrb[43].mxu1 }
 0x4e2   :  { %5257 = vmatpush3.bf16.msra.mxu1 %v5256_v13  ;;  %v1962_v13 = vld [vmem:[%s7389_s9 + $0x170] sm:$0xff]  ;;  %v1965_v16 = vld [vmem:[%s7389_s9 + $0x188] sm:$0xff] }
 0x4e3   :  { %5258 = vmatprep.subr.bf16.mxu1 %v5662_v39  ;;  %v5307_v14 = vpack.c.bf16 %v1963_v29, %v1962_v13  ;;  %v2869_v13 = vld [vmem:[%s7393_s13 + $0xf8] sm:$0xff] }
 0x4e4   :  { %v6529_v18 = vpop.f32.mrb[44].mxu1 }
 0x4e5   :  { %v4521_v42 = vpop.f32.mrb[45].mxu1 }
 0x4e6   :  { %5260 = vmatpush3.bf16.msra.mxu1 %v5259_v36  ;;  %v1968_v42 = vld [vmem:[%s7389_s9 + $0x1a0] sm:$0xff] }
 0x4e7   :  { %5261 = vmatprep.subr.bf16.mxu1 %v5662_v39 }
 0x4e8   :  { %v6538_v48 = vpop.f32.mrb[46].mxu1 }
 0x4e9   :  { %4570 = vmatmul.mubr.msk.f32.vlgmr.msra.gmra.mrb[54].mxu1 %vm272_vm4, %v1872_v7  ;;  %v4524_v32 = vpop.f32.mrb[47].mxu1  ;;  %v1954_v7 = vld [vmem:[%s7389_s9 + $0x130] sm:$0xff] }
 0x4ea   :  { %5263 = vmatpush3.bf16.msra.mxu1 %v5262_v20  ;;  %4588 = vmatprep.mubr.msk.f32.mxu1 %vm5663_vm5, %v5664_v40  ;;  %v5295_v10 = vpack.c.bf16 %v1955_v8, %v1954_v7  ;;  %v1969_v20 = vld [vmem:[%s7389_s9 + $0x1a8] sm:$0xff]  ;;  %v2861_v7 = vld [vmem:[%s7393_s13 + $0xb8] sm:$0xff] }
 0x4eb   :  { %5264 = vmatprep.subr.bf16.mxu1 %v5662_v39  ;;  %v5316_v41 = vpack.c.bf16 %v1969_v20, %v1968_v42 }
 0x4ec   :  { %v6550_v33 = vpop.f32.mrb[48].mxu1 }
 0x4ed   :  { %v4527_v26 = vpop.f32.mrb[49].mxu1 }
 0x4ee   :  { %5266 = vmatpush3.bf16.msra.mxu1 %v5265_v47  ;;  %v1972_v47 = vld [vmem:[%s7389_s9 + $0x1c0] sm:$0xff]  ;;  %v1974_v26 = vld [vmem:[%s7389_s9 + $0x1d0] sm:$0xff] }
 0x4ef   :  { %5267 = vmatprep.subr.bf16.mxu1 %v5662_v39  ;;  %v5322_v54 = vpack.c.bf16 %v1973_v23, %v1972_v47 }
 0x4f0   :  { %v6559_v27 = vpop.f32.mrb[50].mxu1 }
 0x4f1   :  { %v4530_v28 = vpop.f32.mrb[51].mxu1 }
 0x4f2   :  { %5269 = vmatpush3.bf16.msra.mxu1 %v5268_v34  ;;  %v1975_v34 = vld [vmem:[%s7389_s9 + $0x1d8] sm:$0xff]  ;;  %v1977_v28 = vld [vmem:[%s7389_s9 + $0x1e8] sm:$0xff] }
 0x4f3   :  { %5270 = vmatprep.subr.bf16.mxu1 %v5662_v39  ;;  %v5325_v37 = vpack.c.bf16 %v1975_v34, %v1974_v26 }
 0x4f4   :  { %v6568_v45 = vpop.f32.mrb[52].mxu1 }
 0x4f5   :  { %v4533_v46 = vpop.f32.mrb[53].mxu1 }
 0x4f6   :  { %5272 = vmatpush3.bf16.msra.mxu1 %v5271_v44  ;;  %v5328_v44 = vpack.c.bf16 %v1977_v28, %v1976_v38  ;;  %v1980_v46 = vld [vmem:[%s7389_s9 + $0x200] sm:$0xff] }
 0x4f7   :  { %5273 = vmatprep.subr.bf16.mxu1 %v5662_v39  ;;  %v2652_v38 = vld [vmem:[%s7390_s10] sm:$0x1] }
 0x4f9   :  { %4589 = vmatmul.mubr.msk.f32.vlgmr.msra.gmra.mrb[54].mxu1 %vm272_vm4, %v1882_v12  ;;  %v1961_v12 = vld [vmem:[%s7389_s9 + $0x168] sm:$0xff] }
 0x4fa   :  { %5275 = vmatpush3.bf16.msra.mxu1 %v5274_v49  ;;  %4607 = vmatprep.mubr.msk.f32.mxu1 %vm5663_vm5, %v5664_v40  ;;  %v5304_v30 = vpack.c.bf16 %v1961_v12, %v1960_v24  ;;  %v1981_v49 = vld [vmem:[%s7389_s9 + $0x208] sm:$0xff] }
 0x4fb   :  { %5276 = vmatprep.subr.bf16.mxu1 %v5662_v39  ;;  %v5334_v50 = vpack.c.bf16 %v1981_v49, %v1980_v46  ;;  %v2867_v24 = vld [vmem:[%s7393_s13 + $0xe8] sm:$0xff] }
 0x4fe   :  { %5278 = vmatpush3.bf16.msra.mxu1 %v5277_v52  ;;  %v1983_v52 = vld [vmem:[%s7389_s9 + $0x218] sm:$0xff] }
 0x4ff   :  { %5279 = vmatprep.subr.bf16.mxu1 %v5662_v39  ;;  %v5337_v55 = vpack.c.bf16 %v1983_v52, %v1982_v51  ;;  %v2886_v51 = vld [vmem:[%s7393_s13 + $0x180] sm:$0xff]  ;;  %v2887_v52 = vld [vmem:[%s7393_s13 + $0x188] sm:$0xff] }
 0x502   :  { %5281 = vmatpush3.bf16.msra.mxu1 %v5280_v58  ;;  %v1985_v58 = vld [vmem:[%s7389_s9 + $0x228] sm:$0xff] }
 0x503   :  { %5282 = vmatprep.subr.bf16.mxu1 %v5662_v39  ;;  %v5340_v61 = vpack.c.bf16 %v1985_v58, %v1984_v56  ;;  %v2691_v58 = vld [vmem:[%s7392_s12] sm:$0xff] }
 0x506   :  { %5284 = vmatpush3.bf16.msra.mxu1 %v5283_v59 }
 0x507   :  { %5285 = vmatprep.subr.bf16.mxu1 %v5662_v39 }
 0x509   :  { %4608 = vmatmul.mubr.msk.f32.vlgmr.msra.gmra.mrb[54].mxu1 %vm272_vm4, %v6520_v15  ;;  %v1964_v15 = vld [vmem:[%s7389_s9 + $0x180] sm:$0xff] }
 0x50a   :  { %5287 = vmatpush3.bf16.msra.mxu1 %v5286_v0  ;;  %4626 = vmatprep.mubr.msk.f32.mxu1 %vm5663_vm5, %v5664_v40  ;;  %v5310_v36 = vpack.c.bf16 %v1965_v16, %v1964_v15  ;;  %v2856_v0 = vld [vmem:[%s7393_s13 + $0x90] sm:$0xff] }
 0x50b   :  { %5288 = vmatprep.subr.bf16.mxu1 %v5662_v39 }
 0x50e   :  { %5290 = vmatpush3.bf16.msra.mxu1 %v5289_v3  ;;  %v2858_v3 = vld [vmem:[%s7393_s13 + $0xa0] sm:$0xff] }
 0x50f   :  { %5291 = vmatprep.subr.bf16.mxu1 %v5662_v39  ;;  %v5352_v5 = vpack.c.bf16 %v2859_v4, %v2858_v3  ;;  %v2893_v3 = vld [vmem:[%s7393_s13 + $0x1b8] sm:$0xff] }
 0x510   :  { %v2694_v4 = vld [vmem:[%s7392_s12 + $0x18] sm:$0xff] }
 0x512   :  { %5293 = vmatpush3.bf16.msra.mxu1 %v5292_v6  ;;  %v2860_v6 = vld [vmem:[%s7393_s13 + $0xb0] sm:$0xff] }
 0x513   :  { %5294 = vmatprep.subr.bf16.mxu1 %v5662_v39  ;;  %v5355_v8 = vpack.c.bf16 %v2861_v7, %v2860_v6  ;;  %v2894_v6 = vld [vmem:[%s7393_s13 + $0x1c0] sm:$0xff]  ;;  %v2895_v7 = vld [vmem:[%s7393_s13 + $0x1c8] sm:$0xff] }
 0x516   :  { %5296 = vmatpush3.bf16.msra.mxu1 %v5295_v10  ;;  %v2862_v10 = vld [vmem:[%s7393_s13 + $0xc0] sm:$0xff] }
 0x517   :  { %5297 = vmatprep.subr.bf16.mxu1 %v5662_v39  ;;  %v5358_v11 = vpack.c.bf16 %v2863_v9, %v2862_v10  ;;  %v5430_v10 = vpack.c.bf16 %v2895_v7, %v2894_v6  ;;  %v2896_v9 = vld [vmem:[%s7393_s13 + $0x1d0] sm:$0xff]  ;;  %v2910_v6 = vld [vmem:[%s7393_s13 + $0x240] sm:$0xff]  ;;  %v2911_v7 = vld [vmem:[%s7393_s13 + $0x248] sm:$0xff] }
 0x519   :  { %4627 = vmatmul.mubr.msk.f32.vlgmr.msra.gmra.mrb[54].mxu1 %vm272_vm4, %v6529_v18  ;;  %v5313_v18 = vpack.c.bf16 %v1967_v35, %v1966_v17 }
 0x51a   :  { %5299 = vmatpush3.bf16.msra.mxu1 %v5298_v60  ;;  %4645 = vmatprep.mubr.msk.f32.mxu1 %vm5663_vm5, %v5664_v40  ;;  %v2864_v60 = vld [vmem:[%s7393_s13 + $0xd0] sm:$0xff] }
 0x51b   :  { %5300 = vmatprep.subr.bf16.mxu1 %v5662_v39  ;;  %v5361_v19 = vpack.c.bf16 %v2865_v21, %v2864_v60  ;;  %v2696_v60 = vld [vmem:[%s7392_s12 + $0x28] sm:$0xff] }
 0x51e   :  { %5302 = vmatpush3.bf16.msra.mxu1 %v5301_v25  ;;  %v2866_v25 = vld [vmem:[%s7393_s13 + $0xe0] sm:$0xff] }
 0x51f   :  { %5303 = vmatprep.subr.bf16.mxu1 %v5662_v39  ;;  %v5364_v12 = vpack.c.bf16 %v2867_v24, %v2866_v25  ;;  %v2698_v25 = vld [vmem:[%s7392_s12 + $0x38] sm:$0xff]  ;;  %v2699_v24 = vld [vmem:[%s7392_s12 + $0x40] sm:$0xff] }
 0x522   :  { %5305 = vmatpush3.bf16.msra.mxu1 %v5304_v30  ;;  %v2868_v30 = vld [vmem:[%s7393_s13 + $0xf0] sm:$0xff] }
 0x523   :  { %5306 = vmatprep.subr.bf16.mxu1 %v5662_v39  ;;  %v5367_v29 = vpack.c.bf16 %v2869_v13, %v2868_v30  ;;  %v2899_v30 = vld [vmem:[%s7393_s13 + $0x1e8] sm:$0xff] }
 0x526   :  { %5308 = vmatpush3.bf16.msra.mxu1 %v5307_v14 }
 0x527   :  { %5309 = vmatprep.subr.bf16.mxu1 %v5662_v39 }
 0x529   :  { %4646 = vmatmul.mubr.msk.f32.vlgmr.msra.gmra.mrb[54].mxu1 %vm272_vm4, %v6538_v48  ;;  %v1971_v48 = vld [vmem:[%s7389_s9 + $0x1b8] sm:$0xff] }
 0x52a   :  { %5311 = vmatpush3.bf16.msra.mxu1 %v5310_v36  ;;  %4664 = vmatprep.mubr.msk.f32.mxu1 %vm5663_vm5, %v5664_v40  ;;  %v5319_v32 = vpack.c.bf16 %v1971_v48, %v1970_v22 }
 0x52b   :  { %5312 = vmatprep.subr.bf16.mxu1 %v5662_v39 }
 0x52e   :  { %5314 = vmatpush3.bf16.msra.mxu1 %v5313_v18 }
 0x52f   :  { %5315 = vmatprep.subr.bf16.mxu1 %v5662_v39 }
 0x532   :  { %5317 = vmatpush3.bf16.msra.mxu1 %v5316_v41 }
 0x533   :  { %5318 = vmatprep.subr.bf16.mxu1 %v5662_v39 }
 0x536   :  { %5320 = vmatpush3.bf16.msra.mxu1 %v5319_v32 }
 0x537   :  { %5321 = vmatprep.subr.bf16.mxu1 %v5662_v39 }
 0x539   :  { %4665 = vmatmul.mubr.msk.f32.vlgmr.msra.gmra.mrb[54].mxu1 %vm272_vm4, %v6550_v33  ;;  %v1978_v33 = vld [vmem:[%s7389_s9 + $0x1f0] sm:$0xff] }
 0x53a   :  { %5323 = vmatpush3.bf16.msra.mxu1 %v5322_v54  ;;  %4683 = vmatprep.mubr.msk.f32.mxu1 %vm5663_vm5, %v5664_v40  ;;  %v5331_v31 = vpack.c.bf16 %v1979_v43, %v1978_v33  ;;  %v2653_v33 = vld [vmem:[%s7391_s11] sm:$0x1] }
 0x53b   :  { %5324 = vmatprep.subr.bf16.mxu1 %v5662_v39 }
 0x53e   :  { %5326 = vmatpush3.bf16.msra.mxu1 %v5325_v37 }
 0x53f   :  { %5327 = vmatprep.subr.bf16.mxu1 %v5662_v39 }
 0x542   :  { %5329 = vmatpush3.bf16.msra.mxu1 %v5328_v44 }
 0x543   :  { %5330 = vmatprep.subr.bf16.mxu1 %v5662_v39 }
 0x546   :  { %5332 = vmatpush3.bf16.msra.mxu1 %v5331_v31 }
 0x547   :  { %5333 = vmatprep.subr.bf16.mxu1 %v5662_v39 }
 0x549   :  { %4684 = vmatmul.mubr.msk.f32.vlgmr.msra.gmra.mrb[54].mxu1 %vm272_vm4, %v6559_v27  ;;  %v1986_v27 = vld [vmem:[%s7389_s9 + $0x230] sm:$0xff] }
 0x54a   :  { %5335 = vmatpush3.bf16.msra.mxu1 %v5334_v50  ;;  %4702 = vmatprep.mubr.msk.f32.mxu1 %vm5663_vm5, %v5664_v40  ;;  %v5343_v59 = vpack.c.bf16 %v1987_v53, %v1986_v27  ;;  %v2888_v27 = vld [vmem:[%s7393_s13 + $0x190] sm:$0xff]  ;;  %v2889_v53 = vld [vmem:[%s7393_s13 + $0x198] sm:$0xff] }
 0x54b   :  { %5336 = vmatprep.subr.bf16.mxu1 %v5662_v39  ;;  %v5421_v62 = vpack.c.bf16 %v2889_v53, %v2888_v27 }
 0x54e   :  { %5338 = vmatpush3.bf16.msra.mxu1 %v5337_v55 }
 0x54f   :  { %5339 = vmatprep.subr.bf16.mxu1 %v5662_v39 }
 0x552   :  { %5341 = vmatpush3.bf16.msra.mxu1 %v5340_v61  ;;  %v5418_v61 = vpack.c.bf16 %v2887_v52, %v2886_v51  ;;  %v2846_v51 = vld [vmem:[%s7393_s13 + $0x40] sm:$0xff]  ;;  %v2847_v52 = vld [vmem:[%s7393_s13 + $0x48] sm:$0xff] }
 0x553   :  { %5342 = vmatprep.subr.bf16.mxu1 %v5662_v39  ;;  %v5382_v27 = vpack.c.bf16 %v2847_v52, %v2846_v51  ;;  %v2922_v51 = vld [vmem:[%s7393_s13 + $0x2a0] sm:$0xff]  ;;  %v2923_v52 = vld [vmem:[%s7393_s13 + $0x2a8] sm:$0xff] }
 0x556   :  { %5344 = vmatpush3.bf16.msra.mxu1 %v5343_v59  ;;  %v2692_v59 = vld [vmem:[%s7392_s12 + $0x8] sm:$0xff] }
 0x557   :  { %5345 = vmatprep.subr.bf16.mxu1 %v5662_v39 }
 0x559   :  { %4703 = vmatmul.mubr.msk.f32.vlgmr.msra.gmra.mrb[54].mxu1 %vm272_vm4, %v6568_v45  ;;  %v2857_v45 = vld [vmem:[%s7393_s13 + $0x98] sm:$0xff] }
 0x55a   :  { %4766 = vmatprep.mubr.msk.f32.mxu1 %vm5663_vm5, %v5664_v40  ;;  %5347 = vmatpush3.bf16.msra.mxu1 %v5346_v1  ;;  %v5349_v2 = vpack.c.bf16 %v2857_v45, %v2856_v0  ;;  %v2891_v0 = vld [vmem:[%s7393_s13 + $0x1a8] sm:$0xff]  ;;  %v2693_v1 = vld [vmem:[%s7392_s12 + $0x10] sm:$0xff] }
 0x55b   :  { %5348 = vmatprep.subr.bf16.mxu1 %v5662_v39  ;;  %v5424_v45 = vpack.c.bf16 %v2891_v0, %v2890_v63  ;;  %v2908_v63 = vld [vmem:[%s7393_s13 + $0x230] sm:$0xff]  ;;  %v2909_v0 = vld [vmem:[%s7393_s13 + $0x238] sm:$0xff] }
 0x55e   :  { %5350 = vmatpush3.bf16.msra.mxu1 %v5349_v2  ;;  %v2892_v2 = vld [vmem:[%s7393_s13 + $0x1b0] sm:$0xff] }
 0x55f   :  { %5351 = vmatprep.subr.bf16.mxu1 %v5662_v39 }
 0x562   :  { %5353 = vmatpush3.bf16.msra.mxu1 %v5352_v5  ;;  %v5427_v5 = vpack.c.bf16 %v2893_v3, %v2892_v2  ;;  %v5451_v3 = vpack.c.bf16 %v2909_v0, %v2908_v63  ;;  %v2882_v63 = vld [vmem:[%s7393_s13 + $0x160] sm:$0xff]  ;;  %v2883_v0 = vld [vmem:[%s7393_s13 + $0x168] sm:$0xff] }
 0x563   :  { %5354 = vmatprep.subr.bf16.mxu1 %v5662_v39 }
 0x566   :  { %5356 = vmatpush3.bf16.msra.mxu1 %v5355_v8  ;;  %v2695_v8 = vld [vmem:[%s7392_s12 + $0x20] sm:$0xff] }
 0x567   :  { %5357 = vmatprep.subr.bf16.mxu1 %v5662_v39 }
 0x56a   :  { %5359 = vmatpush3.bf16.msra.mxu1 %v5358_v11  ;;  %v2897_v11 = vld [vmem:[%s7393_s13 + $0x1d8] sm:$0xff] }
 0x56b   :  { %5360 = vmatprep.subr.bf16.mxu1 %v5662_v39  ;;  %v5433_v21 = vpack.c.bf16 %v2897_v11, %v2896_v9  ;;  %v5454_v11 = vpack.c.bf16 %v2911_v7, %v2910_v6  ;;  %v2885_v6 = vld [vmem:[%s7393_s13 + $0x178] sm:$0xff]  ;;  %v2928_v7 = vld [vmem:[%s7393_s13 + $0x2d0] sm:$0xff] }
 0x56e   :  { %5362 = vmatpush3.bf16.msra.mxu1 %v5361_v19  ;;  %v2697_v19 = vld [vmem:[%s7392_s12 + $0x30] sm:$0xff] }
 0x56f   :  { %5363 = vmatprep.subr.bf16.mxu1 %v5662_v39 }
 0x572   :  { %5365 = vmatpush3.bf16.msra.mxu1 %v5364_v12  ;;  %v2898_v12 = vld [vmem:[%s7393_s13 + $0x1e0] sm:$0xff] }
 0x573   :  { %5366 = vmatprep.subr.bf16.mxu1 %v5662_v39  ;;  %v5436_v13 = vpack.c.bf16 %v2899_v30, %v2898_v12 }
 0x576   :  { %5368 = vmatpush3.bf16.msra.mxu1 %v5367_v29  ;;  %v2900_v29 = vld [vmem:[%s7393_s13 + $0x1f0] sm:$0xff] }
 0x577   :  { %5369 = vmatprep.subr.bf16.mxu1 %v5662_v39 }
 0x62c   :  { %v2647_v14 = vpop.f32.mrb[54].mxu1 }
 0x62d   :  { %v2654_v15 = vrot.slane %v2647_v14, 4  ;;  %v4704_v16 = vpop.f32.mrb[55].mxu1 }
 0x62e   :  { %v2838_v16 = vld [vmem:[%s7393_s13] sm:$0xff] }
 0x62f   :  { %v2655_v36 = vadd.f32 %v2654_v15, %v2647_v14 }
 0x631   :  { %v2656_v17 = vrot.slane %v2655_v36, 2 }
 0x633   :  { %v2657_v35 = vadd.f32 %v2656_v17, %v2655_v36  ;;  %v2839_v36 = vld [vmem:[%s7393_s13 + $0x8] sm:$0xff] }
 0x635   :  { %v2658_v18 = vrot.slane %v2657_v35, 1 }
 0x637   :  { %v2659_v42 = vadd.f32 %v2658_v18, %v2657_v35  ;;  %v5370_v18 = vpack.c.bf16 %v2839_v36, %v2838_v16  ;;  %v2915_v16 = vld [vmem:[%s7393_s13 + $0x268] sm:$0xff] }
 0x639   :  { %v2661_v20 = vmul.f32 0.125, %v2659_v42  ;;  %v2840_v42 = vld [vmem:[%s7393_s13 + $0x10] sm:$0xff] }
 0x63b   :  { %v2662_v41 = vsub.f32 %v2647_v14, %v2661_v20 }
 0x63d   :  { %v2663_v22 = vmul.f32 %v2662_v41, %v2662_v41 }
 0x63f   :  { %v2664_v48 = vrot.slane %v2663_v22, 4 }
 0x641   :  { %v2665_v32 = vadd.f32 %v2664_v48, %v2663_v22 }
 0x643   :  { %v2666_v47 = vrot.slane %v2665_v32, 2 }
 0x645   :  { %v2667_v23 = vadd.f32 %v2666_v47, %v2665_v32  ;;  %v2842_v32 = vld [vmem:[%s7393_s13 + $0x20] sm:$0xff]  ;;  %v2843_v47 = vld [vmem:[%s7393_s13 + $0x28] sm:$0xff] }
 0x647   :  { %v2668_v54 = vrot.slane %v2667_v23, 1 }
 0x649   :  { %v2669_v26 = vadd.f32 %v2668_v54, %v2667_v23  ;;  %v2902_v23 = vld [vmem:[%s7393_s13 + $0x200] sm:$0xff]  ;;  %v2903_v54 = vld [vmem:[%s7393_s13 + $0x208] sm:$0xff] }
 0x64b   :  { %v2670_v34 = vmul.f32 0.125, %v2669_v26 }
 0x64d   :  { %v2671_v37 = vadd.f32 1e-05, %v2670_v34 }
 0x64f   :  { %5633 = vrsqrt.f32 %v2671_v37  ;;  %v5376_v37 = vpack.c.bf16 %v2843_v47, %v2842_v32  ;;  %v2874_v32 = vld [vmem:[%s7393_s13 + $0x120] sm:$0xff]  ;;  %v2875_v47 = vld [vmem:[%s7393_s13 + $0x128] sm:$0xff] }
 0x659   :  { %v5634_v28 = vpop.eup %5633 }
 0x65a   :  { %v2673_v44 = vmul.f32 %v5634_v28, %v2652_v38  ;;  %v5442_v38 = vpack.c.bf16 %v2903_v54, %v2902_v23  ;;  %v2844_v28 = vld [vmem:[%s7393_s13 + $0x30] sm:$0xff]  ;;  %v2919_v23 = vld [vmem:[%s7393_s13 + $0x288] sm:$0xff]  ;;  %v5400_v54 = vpack.c.bf16 %v2875_v47, %v2874_v32  ;;  %v2945_v47 = vld [vmem:[%s7393_s13 + $0x358] sm:$0xff] }
 0x65b   :  { %v2944_v32 = vld [vmem:[%s7393_s13 + $0x350] sm:$0xff] }
 0x65c   :  { %v2674_v43 = vmul.f32 %v2673_v44, %v2661_v20  ;;  %v2680_v31 = vrot.slane %v2673_v44, %v5953_v57  ;;  %v2841_v20 = vld [vmem:[%s7393_s13 + $0x18] sm:$0xff] }
 0x65d   :  { %v5373_v48 = vpack.c.bf16 %v2841_v20, %v2840_v42  ;;  %v2845_v44 = vld [vmem:[%s7393_s13 + $0x38] sm:$0xff]  ;;  %v2916_v20 = vld [vmem:[%s7393_s13 + $0x270] sm:$0xff] }
 0x65e   :  { %v2675_v46 = vsub.f32 %v2653_v33, %v2674_v43  ;;  %v2682_v49 = vmul.f32 %v2680_v31, %v2647_v14  ;;  %v2901_v14 = vld [vmem:[%s7393_s13 + $0x1f8] sm:$0xff]  ;;  %v2904_v33 = vld [vmem:[%s7393_s13 + $0x210] sm:$0xff] }
 0x65f   :  { %v5439_v15 = vpack.c.bf16 %v2901_v14, %v2900_v29  ;;  %v2905_v43 = vld [vmem:[%s7393_s13 + $0x218] sm:$0xff]  ;;  %v2870_v29 = vld [vmem:[%s7393_s13 + $0x100] sm:$0xff]  ;;  %v2871_v14 = vld [vmem:[%s7393_s13 + $0x108] sm:$0xff] }
 0x660   :  { %v2687_v50 = vrot.slane %v2675_v46, %v5953_v57  ;;  %v5394_v36 = vpack.c.bf16 %v2871_v14, %v2870_v29  ;;  %v2873_v42 = vld [vmem:[%s7393_s13 + $0x118] sm:$0xff]  ;;  %v2935_v29 = vld [vmem:[%s7393_s13 + $0x308] sm:$0xff] }
 0x662   :  { %v2689_v55 = vadd.f32 %v2687_v50, %v2682_v49  ;;  %v5379_v49 = vpack.c.bf16 %v2845_v44, %v2844_v28  ;;  %v5445_v50 = vpack.c.bf16 %v2905_v43, %v2904_v33  ;;  %v2877_v28 = vld [vmem:[%s7393_s13 + $0x138] sm:$0xff]  ;;  %v2920_v44 = vld [vmem:[%s7393_s13 + $0x290] sm:$0xff] }
 0x663   :  { %v2921_v33 = vld [vmem:[%s7393_s13 + $0x298] sm:$0xff] }
 0x664   :  { %v2690_v56 = vmax.f32 %v2689_v55, 0.0  ;;  %v2906_v55 = vld [vmem:[%s7393_s13 + $0x220] sm:$0xff] }
 0x666   :  { %4706 = vmatpush3.msra.mxu0 %v2690_v56  ;;  %v2907_v56 = vld [vmem:[%s7393_s13 + $0x228] sm:$0xff] }
 0x667   :  { %4708 = vmatmul.mubr.msk.f32.vlgmr.msra.gmra.mrb[20].mxu0 %vm2700_vm7, %v2691_v58  ;;  %5417 = vmatprep.subr.bf16.mxu0 %v5662_v39  ;;  %v5448_v53 = vpack.c.bf16 %v2907_v56, %v2906_v55  ;;  %v5472_v56 = vpack.c.bf16 %v2923_v52, %v2922_v51  ;;  %v2954_v51 = vld [vmem:[%s7393_s13 + $0x3a0] sm:$0xff]  ;;  %v2955_v52 = vld [vmem:[%s7393_s13 + $0x3a8] sm:$0xff] }
 0x668   :  { %4710 = vmatprep.mubr.msk.f32.mxu0 %vm5663_vm5, %v5664_v40  ;;  %5419 = vmatpush3.bf16.msra.mxu0 %v5418_v61 }
 0x669   :  { %5420 = vmatprep.subr.bf16.mxu0 %v5662_v39 }
 0x66b   :  { %4711 = vmatmul.mubr.msk.f32.gmra.mrb[22].mxu0 %vm2700_vm7, %v2692_v59  ;;  %v2848_v59 = vld [vmem:[%s7393_s13 + $0x50] sm:$0xff] }
 0x66c   :  { %4713 = vmatprep.mubr.msk.f32.mxu0 %vm5663_vm5, %v5664_v40  ;;  %5422 = vmatpush3.bf16.msra.mxu0 %v5421_v62  ;;  %v2849_v62 = vld [vmem:[%s7393_s13 + $0x58] sm:$0xff] }
 0x66d   :  { %5423 = vmatprep.subr.bf16.mxu0 %v5662_v39  ;;  %v5385_v2 = vpack.c.bf16 %v2849_v62, %v2848_v59 }
 0x66f   :  { %4714 = vmatmul.mubr.msk.f32.gmra.mrb[24].mxu0 %vm2700_vm7, %v2693_v1 }
 0x670   :  { %4716 = vmatprep.mubr.msk.f32.mxu0 %vm5663_vm5, %v5664_v40  ;;  %5425 = vmatpush3.bf16.msra.mxu0 %v5424_v45 }
 0x671   :  { %5426 = vmatprep.subr.bf16.mxu0 %v5662_v39 }
 0x673   :  { %4717 = vmatmul.mubr.msk.f32.gmra.mrb[26].mxu0 %vm2700_vm7, %v2694_v4  ;;  %v2850_v4 = vld [vmem:[%s7393_s13 + $0x60] sm:$0xff] }
 0x674   :  { %4719 = vmatprep.mubr.msk.f32.mxu0 %vm5663_vm5, %v5664_v40  ;;  %5428 = vmatpush3.bf16.msra.mxu0 %v5427_v5  ;;  %v2851_v5 = vld [vmem:[%s7393_s13 + $0x68] sm:$0xff] }
 0x675   :  { %5429 = vmatprep.subr.bf16.mxu0 %v5662_v39  ;;  %v5388_v9 = vpack.c.bf16 %v2851_v5, %v2850_v4  ;;  %v2884_v5 = vld [vmem:[%s7393_s13 + $0x170] sm:$0xff] }
 0x677   :  { %4720 = vmatmul.mubr.msk.f32.gmra.mrb[28].mxu0 %vm2700_vm7, %v2695_v8 }
 0x678   :  { %4722 = vmatprep.mubr.msk.f32.mxu0 %vm5663_vm5, %v5664_v40  ;;  %5431 = vmatpush3.bf16.msra.mxu0 %v5430_v10 }
 0x679   :  { %5432 = vmatprep.subr.bf16.mxu0 %v5662_v39 }
 0x67b   :  { %4723 = vmatmul.mubr.msk.f32.gmra.mrb[30].mxu0 %vm2700_vm7, %v2696_v60  ;;  %v2852_v60 = vld [vmem:[%s7393_s13 + $0x70] sm:$0xff] }
 0x67c   :  { %4725 = vmatprep.mubr.msk.f32.mxu0 %vm5663_vm5, %v5664_v40  ;;  %5434 = vmatpush3.bf16.msra.mxu0 %v5433_v21  ;;  %v2853_v21 = vld [vmem:[%s7393_s13 + $0x78] sm:$0xff] }
 0x67d   :  { %5435 = vmatprep.subr.bf16.mxu0 %v5662_v39  ;;  %v5391_v30 = vpack.c.bf16 %v2853_v21, %v2852_v60  ;;  %v2930_v60 = vld [vmem:[%s7393_s13 + $0x2e0] sm:$0xff]  ;;  %v2931_v21 = vld [vmem:[%s7393_s13 + $0x2e8] sm:$0xff] }
 0x67f   :  { %4726 = vmatmul.mubr.msk.f32.gmra.mrb[32].mxu0 %vm2700_vm7, %v2697_v19  ;;  %v2912_v19 = vld [vmem:[%s7393_s13 + $0x250] sm:$0xff] }
 0x680   :  { %4728 = vmatprep.mubr.msk.f32.mxu0 %vm5663_vm5, %v5664_v40  ;;  %5437 = vmatpush3.bf16.msra.mxu0 %v5436_v13 }
 0x681   :  { %5438 = vmatprep.subr.bf16.mxu0 %v5662_v39 }
 0x683   :  { %4729 = vmatmul.mubr.msk.f32.gmra.mrb[34].mxu0 %vm2700_vm7, %v2698_v25  ;;  %v2913_v25 = vld [vmem:[%s7393_s13 + $0x258] sm:$0xff] }
 0x684   :  { %4731 = vmatprep.mubr.msk.f32.mxu0 %vm5663_vm5, %v5664_v40  ;;  %5440 = vmatpush3.bf16.msra.mxu0 %v5439_v15  ;;  %v5457_v13 = vpack.c.bf16 %v2913_v25, %v2912_v19  ;;  %v2914_v15 = vld [vmem:[%s7393_s13 + $0x260] sm:$0xff]  ;;  %v5484_v19 = vpack.c.bf16 %v2931_v21, %v2930_v60  ;;  %v2932_v25 = vld [vmem:[%s7393_s13 + $0x2f0] sm:$0xff] }
 0x685   :  { %5441 = vmatprep.subr.bf16.mxu0 %v5662_v39  ;;  %v2970_v21 = vld [vmem:[%s7393_s13 + $0x420] sm:$0xff] }
 0x687   :  { %4732 = vmatmul.mubr.msk.f32.gmra.mrb[36].mxu0 %vm2700_vm7, %v2699_v24 }
 0x688   :  { %4871 = vmatprep.mubr.msk.f32.mxu0 %vm5663_vm5, %v5664_v40 }
 0x73a   :  { %v6941_v17 = vpop.f32.mrb[20].mxu0 }
 0x73b   :  { %v4709_v35 = vpop.f32.mrb[21].mxu0 }
 0x73c   :  { %v5460_v35 = vpack.c.bf16 %v2915_v16, %v2914_v15  ;;  %v2937_v15 = vld [vmem:[%s7393_s13 + $0x318] sm:$0xff] }
 0x73e   :  { %v2799_v41 = vpop.f32.mrb[22].mxu0 }
 0x73f   :  { %4767 = vmatmul.mubr.f32.vlgmr.msra.gmra.mrb[56].mxu1 %v2799_v41  ;;  %v4712_v22 = vpop.f32.mrb[23].mxu0  ;;  %v2917_v41 = vld [vmem:[%s7393_s13 + $0x278] sm:$0xff] }
 0x740   :  { %5371 = vmatpush3.bf16.msra.mxu1 %v5370_v18  ;;  %4801 = vmatprep.mubr.msk.f32.mxu1 %vm5663_vm5, %v5664_v40  ;;  %v2872_v18 = vld [vmem:[%s7393_s13 + $0x110] sm:$0xff] }
 0x741   :  { %5372 = vmatprep.subr.bf16.mxu1 %v5662_v39  ;;  %v5397_v22 = vpack.c.bf16 %v2873_v42, %v2872_v18  ;;  %v2941_v42 = vld [vmem:[%s7393_s13 + $0x338] sm:$0xff] }
 0x742   :  { %v6964_v26 = vpop.f32.mrb[24].mxu0 }
 0x743   :  { %v4715_v34 = vpop.f32.mrb[25].mxu0 }
 0x744   :  { %5374 = vmatpush3.bf16.msra.mxu1 %v5373_v48  ;;  %v5463_v48 = vpack.c.bf16 %v2917_v41, %v2916_v20  ;;  %v2942_v41 = vld [vmem:[%s7393_s13 + $0x340] sm:$0xff] }
 0x745   :  { %5375 = vmatprep.subr.bf16.mxu1 %v5662_v39 }
 0x746   :  { %v2809_v31 = vpop.f32.mrb[26].mxu0 }
 0x747   :  { %4872 = vmatmul.mubr.f32.vlgmr.msra.gmra.mrb[38].mxu0 %v2809_v31  ;;  %v4718_v46 = vpop.f32.mrb[27].mxu0 }
 0x748   :  { %5377 = vmatpush3.bf16.msra.mxu1 %v5376_v37  ;;  %5443 = vmatpush3.bf16.msra.mxu0 %v5442_v38  ;;  %v2876_v37 = vld [vmem:[%s7393_s13 + $0x130] sm:$0xff]  ;;  %v5469_v46 = vpack.c.bf16 %v2921_v33, %v2920_v44  ;;  %v2950_v33 = vld [vmem:[%s7393_s13 + $0x380] sm:$0xff] }
 0x749   :  { %5378 = vmatprep.subr.bf16.mxu1 %v5662_v39  ;;  %5444 = vmatprep.subr.bf16.mxu0 %v5662_v39  ;;  %v5403_v31 = vpack.c.bf16 %v2877_v28, %v2876_v37  ;;  %v2948_v37 = vld [vmem:[%s7393_s13 + $0x370] sm:$0xff]  ;;  %v2949_v28 = vld [vmem:[%s7393_s13 + $0x378] sm:$0xff] }
 0x74a   :  { %v6993_v58 = vpop.f32.mrb[28].mxu0  ;;  %4906 = vmatprep.mubr.msk.f32.mxu0 %vm5663_vm5, %v5664_v40  ;;  %v5511_v44 = vpack.c.bf16 %v2949_v28, %v2948_v37 }
 0x74b   :  { %v4721_v61 = vpop.f32.mrb[29].mxu0 }
 0x74c   :  { %5380 = vmatpush3.bf16.msra.mxu1 %v5379_v49  ;;  %5446 = vmatpush3.bf16.msra.mxu0 %v5445_v50  ;;  %v2878_v49 = vld [vmem:[%s7393_s13 + $0x140] sm:$0xff]  ;;  %v2879_v50 = vld [vmem:[%s7393_s13 + $0x148] sm:$0xff]  ;;  %v2881_v61 = vld [vmem:[%s7393_s13 + $0x158] sm:$0xff] }
 0x74d   :  { %5381 = vmatprep.subr.bf16.mxu1 %v5662_v39  ;;  %5447 = vmatprep.subr.bf16.mxu0 %v5662_v39  ;;  %v5406_v55 = vpack.c.bf16 %v2879_v50, %v2878_v49  ;;  %v2953_v49 = vld [vmem:[%s7393_s13 + $0x398] sm:$0xff] }
 0x74e   :  { %v7011_v1 = vpop.f32.mrb[30].mxu0 }
 0x74f   :  { %v4724_v45 = vpop.f32.mrb[31].mxu0 }
 0x750   :  { %5383 = vmatpush3.bf16.msra.mxu1 %v5382_v27  ;;  %5449 = vmatpush3.bf16.msra.mxu0 %v5448_v53  ;;  %v2924_v27 = vld [vmem:[%s7393_s13 + $0x2b0] sm:$0xff]  ;;  %v2925_v53 = vld [vmem:[%s7393_s13 + $0x2b8] sm:$0xff]  ;;  %v2926_v45 = vld [vmem:[%s7393_s13 + $0x2c0] sm:$0xff] }
 0x751   :  { %5384 = vmatprep.subr.bf16.mxu1 %v5662_v39  ;;  %5450 = vmatprep.subr.bf16.mxu0 %v5662_v39  ;;  %v5475_v62 = vpack.c.bf16 %v2925_v53, %v2924_v27  ;;  %v2959_v27 = vld [vmem:[%s7393_s13 + $0x3c8] sm:$0xff] }
 0x752   :  { %v7027_v8 = vpop.f32.mrb[32].mxu0 }
 0x753   :  { %v4727_v10 = vpop.f32.mrb[33].mxu0 }
 0x754   :  { %5386 = vmatpush3.bf16.msra.mxu1 %v5385_v2  ;;  %5452 = vmatpush3.bf16.msra.mxu0 %v5451_v3  ;;  %v2927_v2 = vld [vmem:[%s7393_s13 + $0x2c8] sm:$0xff]  ;;  %v5412_v3 = vpack.c.bf16 %v2883_v0, %v2882_v63  ;;  %v2929_v10 = vld [vmem:[%s7393_s13 + $0x2d8] sm:$0xff]  ;;  %v2962_v0 = vld [vmem:[%s7393_s13 + $0x3e0] sm:$0xff] }
 0x755   :  { %5387 = vmatprep.subr.bf16.mxu1 %v5662_v39  ;;  %5453 = vmatprep.subr.bf16.mxu0 %v5662_v39  ;;  %v5478_v4 = vpack.c.bf16 %v2927_v2, %v2926_v45  ;;  %v2963_v45 = vld [vmem:[%s7393_s13 + $0x3e8] sm:$0xff] }
 0x756   :  { %v7043_v24 = vpop.f32.mrb[34].mxu0  ;;  %v5532_v2 = vpack.c.bf16 %v2963_v45, %v2962_v0 }
 0x757   :  { %v4730_v12 = vpop.f32.mrb[35].mxu0 }
 0x758   :  { %5389 = vmatpush3.bf16.msra.mxu1 %v5388_v9  ;;  %5455 = vmatpush3.bf16.msra.mxu0 %v5454_v11  ;;  %v5415_v9 = vpack.c.bf16 %v2885_v6, %v2884_v5  ;;  %v5481_v11 = vpack.c.bf16 %v2929_v10, %v2928_v7  ;;  %v2933_v12 = vld [vmem:[%s7393_s13 + $0x2f8] sm:$0xff]  ;;  %v2966_v6 = vld [vmem:[%s7393_s13 + $0x400] sm:$0xff]  ;;  %v2967_v7 = vld [vmem:[%s7393_s13 + $0x408] sm:$0xff] }
 0x759   :  { %5390 = vmatprep.subr.bf16.mxu1 %v5662_v39  ;;  %5456 = vmatprep.subr.bf16.mxu0 %v5662_v39  ;;  %v5538_v10 = vpack.c.bf16 %v2967_v7, %v2966_v6 }
 0x75a   :  { %v7093_v38 = vpop.f32.mrb[36].mxu0 }
 0x75b   :  { %v4733_v43 = vpop.f32.mrb[37].mxu0 }
 0x75c   :  { %5392 = vmatpush3.bf16.msra.mxu1 %v5391_v30  ;;  %5458 = vmatpush3.bf16.msra.mxu0 %v5457_v13  ;;  %v5487_v30 = vpack.c.bf16 %v2933_v12, %v2932_v25  ;;  %v2934_v13 = vld [vmem:[%s7393_s13 + $0x300] sm:$0xff]  ;;  %v2951_v43 = vld [vmem:[%s7393_s13 + $0x388] sm:$0xff] }
 0x75d   :  { %5393 = vmatprep.subr.bf16.mxu1 %v5662_v39  ;;  %5459 = vmatprep.subr.bf16.mxu0 %v5662_v39  ;;  %v5490_v14 = vpack.c.bf16 %v2935_v29, %v2934_v13  ;;  %v2975_v13 = vld [vmem:[%s7393_s13 + $0x448] sm:$0xff] }
 0x75f   :  { %4802 = vmatmul.mubr.f32.vlgmr.msra.gmra.mrb[56].mxu1 %v6941_v17  ;;  %v2918_v17 = vld [vmem:[%s7393_s13 + $0x280] sm:$0xff] }
 0x760   :  { %5395 = vmatpush3.bf16.msra.mxu1 %v5394_v36  ;;  %5461 = vmatpush3.bf16.msra.mxu0 %v5460_v35  ;;  %v5466_v34 = vpack.c.bf16 %v2919_v23, %v2918_v17  ;;  %v2938_v36 = vld [vmem:[%s7393_s13 + $0x320] sm:$0xff]  ;;  %v2939_v35 = vld [vmem:[%s7393_s13 + $0x328] sm:$0xff]  ;;  %v5505_v17 = vpack.c.bf16 %v2945_v47, %v2944_v32 }
 0x761   :  { %5396 = vmatprep.subr.bf16.mxu1 %v5662_v39  ;;  %5462 = vmatprep.subr.bf16.mxu0 %v5662_v39  ;;  %v5496_v18 = vpack.c.bf16 %v2939_v35, %v2938_v36  ;;  %v2946_v23 = vld [vmem:[%s7393_s13 + $0x360] sm:$0xff]  ;;  %v2979_v36 = vld [vmem:[%s7393_s13 + $0x468] sm:$0xff] }
 0x762   :  { %4836 = vmatprep.mubr.msk.f32.mxu1 %vm5663_vm5, %v5664_v40 }
 0x764   :  { %5398 = vmatpush3.bf16.msra.mxu1 %v5397_v22  ;;  %5464 = vmatpush3.bf16.msra.mxu0 %v5463_v48  ;;  %v2943_v22 = vld [vmem:[%s7393_s13 + $0x348] sm:$0xff] }
 0x765   :  { %5399 = vmatprep.subr.bf16.mxu1 %v5662_v39  ;;  %5465 = vmatprep.subr.bf16.mxu0 %v5662_v39  ;;  %v5502_v48 = vpack.c.bf16 %v2943_v22, %v2942_v41 }
 0x767   :  { %4907 = vmatmul.mubr.f32.vlgmr.msra.gmra.mrb[38].mxu0 %v6993_v58  ;;  %v2880_v58 = vld [vmem:[%s7393_s13 + $0x150] sm:$0xff] }
 0x768   :  { %5401 = vmatpush3.bf16.msra.mxu1 %v5400_v54  ;;  %5467 = vmatpush3.bf16.msra.mxu0 %v5466_v34  ;;  %v5409_v59 = vpack.c.bf16 %v2881_v61, %v2880_v58  ;;  %v2947_v54 = vld [vmem:[%s7393_s13 + $0x368] sm:$0xff]  ;;  %v2958_v61 = vld [vmem:[%s7393_s13 + $0x3c0] sm:$0xff] }
 0x769   :  { %5402 = vmatprep.subr.bf16.mxu1 %v5662_v39  ;;  %5468 = vmatprep.subr.bf16.mxu0 %v5662_v39  ;;  %v5508_v34 = vpack.c.bf16 %v2947_v54, %v2946_v23  ;;  %v5526_v53 = vpack.c.bf16 %v2959_v27, %v2958_v61 }
 0x76a   :  { %4941 = vmatprep.mubr.msk.f32.mxu0 %vm5663_vm5, %v5664_v40 }
 0x76c   :  { %5404 = vmatpush3.bf16.msra.mxu1 %v5403_v31  ;;  %5470 = vmatpush3.bf16.msra.mxu0 %v5469_v46  ;;  %v5514_v31 = vpack.c.bf16 %v2951_v43, %v2950_v33  ;;  %v2952_v46 = vld [vmem:[%s7393_s13 + $0x390] sm:$0xff] }
 0x76d   :  { %5405 = vmatprep.subr.bf16.mxu1 %v5662_v39  ;;  %5471 = vmatprep.subr.bf16.mxu0 %v5662_v39  ;;  %v5517_v50 = vpack.c.bf16 %v2953_v49, %v2952_v46 }
 0x770   :  { %5407 = vmatpush3.bf16.msra.mxu1 %v5406_v55  ;;  %5473 = vmatpush3.bf16.msra.mxu0 %v5472_v56  ;;  %v5520_v55 = vpack.c.bf16 %v2955_v52, %v2954_v51  ;;  %v2957_v56 = vld [vmem:[%s7393_s13 + $0x3b8] sm:$0xff]  ;;  %v3619_v52 = vld [vmem:[%s7394_s14] sm:$0x1]  ;;  %s5637_s14 = scalar_lea.vmem %s3665_s3, 128 }
 0x771   :  { %5408 = vmatprep.subr.bf16.mxu1 %v5662_v39  ;;  %5474 = vmatprep.subr.bf16.mxu0 %v5662_v39  ;;  %p5638_p0 = scmp.ne.s32.totalorder %s3665_s3, %s5637_s14  ;;  %p5643_p2 = scmp.lt.s32.totalorder %s5637_s14, %s5637_s14 }
 0x773   :  { %p5644_p3 = por %p5643_p2, %p5642_p1 }
 0x774   :  { %5410 = vmatpush3.bf16.msra.mxu1 %v5409_v59  ;;  %5476 = vmatpush3.bf16.msra.mxu0 %v5475_v62  ;;  %v2960_v59 = vld [vmem:[%s7393_s13 + $0x3d0] sm:$0xff]  ;;  %v2961_v62 = vld [vmem:[%s7393_s13 + $0x3d8] sm:$0xff] }
 0x775   :  { %5411 = vmatprep.subr.bf16.mxu1 %v5662_v39  ;;  %5477 = vmatprep.subr.bf16.mxu0 %v5662_v39  ;;  %v5529_v63 = vpack.c.bf16 %v2961_v62, %v2960_v59  ;;  %p5645_p4 = pnand %p5644_p3, %p5638_p0 }
 0x778   :  { %5413 = vmatpush3.bf16.msra.mxu1 %v5412_v3  ;;  %5479 = vmatpush3.bf16.msra.mxu0 %v5478_v4  ;;  %v2964_v3 = vld [vmem:[%s7393_s13 + $0x3f0] sm:$0xff]  ;;  %v2965_v4 = vld [vmem:[%s7393_s13 + $0x3f8] sm:$0xff] }
 0x779   :  { %5414 = vmatprep.subr.bf16.mxu1 %v5662_v39  ;;  %5480 = vmatprep.subr.bf16.mxu0 %v5662_v39  ;;  %v5535_v5 = vpack.c.bf16 %v2965_v4, %v2964_v3 }
 0x77c   :  { %5416 = vmatpush3.bf16.msra.mxu1 %v5415_v9  ;;  %5482 = vmatpush3.bf16.msra.mxu0 %v5481_v11  ;;  %v2968_v9 = vld [vmem:[%s7393_s13 + $0x410] sm:$0xff]  ;;  %v2969_v11 = vld [vmem:[%s7393_s13 + $0x418] sm:$0xff] }
 0x77d   :  { %5483 = vmatprep.subr.bf16.mxu0 %v5662_v39  ;;  %v5541_v60 = vpack.c.bf16 %v2969_v11, %v2968_v9 }
 0x77f   :  { %4837 = vmatmul.mubr.f32.vlgmr.msra.gmra.mrb[56].mxu1 %v6964_v26  ;;  %v2936_v26 = vld [vmem:[%s7393_s13 + $0x310] sm:$0xff] }
 0x780   :  { %5485 = vmatpush3.bf16.msra.mxu0 %v5484_v19  ;;  %v5493_v16 = vpack.c.bf16 %v2937_v15, %v2936_v26  ;;  %v2971_v19 = vld [vmem:[%s7393_s13 + $0x428] sm:$0xff]  ;;  %v2977_v26 = vld [vmem:[%s7393_s13 + $0x458] sm:$0xff] }
 0x781   :  { %5486 = vmatprep.subr.bf16.mxu0 %v5662_v39  ;;  %v5544_v25 = vpack.c.bf16 %v2971_v19, %v2970_v21 }
 0x784   :  { %5488 = vmatpush3.bf16.msra.mxu0 %v5487_v30  ;;  %v2974_v30 = vld [vmem:[%s7393_s13 + $0x440] sm:$0xff] }
 0x785   :  { %5489 = vmatprep.subr.bf16.mxu0 %v5662_v39  ;;  %v5550_v29 = vpack.c.bf16 %v2975_v13, %v2974_v30 }
 0x787   :  { %4942 = vmatmul.mubr.f32.vlgmr.msra.gmra.mrb[38].mxu0 %v7011_v1  ;;  %v2940_v1 = vld [vmem:[%s7393_s13 + $0x330] sm:$0xff] }
 0x788   :  { %5491 = vmatpush3.bf16.msra.mxu0 %v5490_v14  ;;  %4976 = vmatprep.mubr.msk.f32.mxu0 %vm5663_vm5, %v5664_v40  ;;  %v5499_v20 = vpack.c.bf16 %v2941_v42, %v2940_v1  ;;  %v2976_v14 = vld [vmem:[%s7393_s13 + $0x450] sm:$0xff]  ;;  %v2981_v1 = vld [vmem:[%s7393_s13 + $0x478] sm:$0xff] }
 0x789   :  { %5492 = vmatprep.subr.bf16.mxu0 %v5662_v39  ;;  %v5553_v15 = vpack.c.bf16 %v2977_v26, %v2976_v14 }
 0x78c   :  { %5494 = vmatpush3.bf16.msra.mxu0 %v5493_v16  ;;  %v2978_v16 = vld [vmem:[%s7393_s13 + $0x460] sm:$0xff] }
 0x78d   :  { %5495 = vmatprep.subr.bf16.mxu0 %v5662_v39  ;;  %v5556_v35 = vpack.c.bf16 %v2979_v36, %v2978_v16 }
 0x790   :  { %5497 = vmatpush3.bf16.msra.mxu0 %v5496_v18  ;;  %v2980_v18 = vld [vmem:[%s7393_s13 + $0x470] sm:$0xff] }
 0x791   :  { %5498 = vmatprep.subr.bf16.mxu0 %v5662_v39  ;;  %v5559_v42 = vpack.c.bf16 %v2981_v1, %v2980_v18 }
 0x794   :  { %5500 = vmatpush3.bf16.msra.mxu0 %v5499_v20 }
 0x795   :  { %5501 = vmatprep.subr.bf16.mxu0 %v5662_v39 }
 0x798   :  { %5503 = vmatpush3.bf16.msra.mxu0 %v5502_v48 }
 0x799   :  { %5504 = vmatprep.subr.bf16.mxu0 %v5662_v39 }
 0x79c   :  { %5506 = vmatpush3.bf16.msra.mxu0 %v5505_v17 }
 0x79d   :  { %5507 = vmatprep.subr.bf16.mxu0 %v5662_v39 }
 0x7a0   :  { %5509 = vmatpush3.bf16.msra.mxu0 %v5508_v34 }
 0x7a1   :  { %5510 = vmatprep.subr.bf16.mxu0 %v5662_v39 }
 0x7a4   :  { %5512 = vmatpush3.bf16.msra.mxu0 %v5511_v44 }
 0x7a5   :  { %5513 = vmatprep.subr.bf16.mxu0 %v5662_v39 }
 0x7a7   :  { %4977 = vmatmul.mubr.f32.vlgmr.msra.gmra.mrb[38].mxu0 %v7027_v8  ;;  %v2956_v8 = vld [vmem:[%s7393_s13 + $0x3b0] sm:$0xff] }
 0x7a8   :  { %5515 = vmatpush3.bf16.msra.mxu0 %v5514_v31  ;;  %5011 = vmatprep.mubr.msk.f32.mxu0 %vm5663_vm5, %v5664_v40  ;;  %v5523_v58 = vpack.c.bf16 %v2957_v56, %v2956_v8  ;;  %v3620_v56 = vld [vmem:[%s7395_s15] sm:$0x1] }
 0x7a9   :  { %5516 = vmatprep.subr.bf16.mxu0 %v5662_v39 }
 0x7ac   :  { %5518 = vmatpush3.bf16.msra.mxu0 %v5517_v50 }
 0x7ad   :  { %5519 = vmatprep.subr.bf16.mxu0 %v5662_v39 }
 0x7b0   :  { %5521 = vmatpush3.bf16.msra.mxu0 %v5520_v55 }
 0x7b1   :  { %5522 = vmatprep.subr.bf16.mxu0 %v5662_v39 }
 0x7b4   :  { %5524 = vmatpush3.bf16.msra.mxu0 %v5523_v58 }
 0x7b5   :  { %5525 = vmatprep.subr.bf16.mxu0 %v5662_v39 }
 0x7b8   :  { %5527 = vmatpush3.bf16.msra.mxu0 %v5526_v53 }
 0x7b9   :  { %5528 = vmatprep.subr.bf16.mxu0 %v5662_v39 }
 0x7bc   :  { %5530 = vmatpush3.bf16.msra.mxu0 %v5529_v63 }
 0x7bd   :  { %5531 = vmatprep.subr.bf16.mxu0 %v5662_v39 }
 0x7c0   :  { %5533 = vmatpush3.bf16.msra.mxu0 %v5532_v2 }
 0x7c1   :  { %5534 = vmatprep.subr.bf16.mxu0 %v5662_v39 }
 0x7c4   :  { %5536 = vmatpush3.bf16.msra.mxu0 %v5535_v5 }
 0x7c5   :  { %5537 = vmatprep.subr.bf16.mxu0 %v5662_v39 }
 0x7c7   :  { %5012 = vmatmul.mubr.f32.vlgmr.msra.gmra.mrb[38].mxu0 %v7043_v24  ;;  %v2972_v24 = vld [vmem:[%s7393_s13 + $0x430] sm:$0xff] }
 0x7c8   :  { %5539 = vmatpush3.bf16.msra.mxu0 %v5538_v10  ;;  %5046 = vmatprep.mubr.msk.f32.mxu0 %vm5663_vm5, %v5664_v40  ;;  %v2973_v40 = vld [vmem:[%s7393_s13 + $0x438] sm:$0xff] }
 0x7c9   :  { %5540 = vmatprep.subr.bf16.mxu0 %v5662_v39  ;;  %v5547_v12 = vpack.c.bf16 %v2973_v40, %v2972_v24 }
 0x7cc   :  { %5542 = vmatpush3.bf16.msra.mxu0 %v5541_v60 }
 0x7cd   :  { %5543 = vmatprep.subr.bf16.mxu0 %v5662_v39 }
 0x7d0   :  { %5545 = vmatpush3.bf16.msra.mxu0 %v5544_v25 }
 0x7d1   :  { %5546 = vmatprep.subr.bf16.mxu0 %v5662_v39 }
 0x7d4   :  { %5548 = vmatpush3.bf16.msra.mxu0 %v5547_v12 }
 0x7d5   :  { %5549 = vmatprep.subr.bf16.mxu0 %v5662_v39 }
 0x7d8   :  { %5551 = vmatpush3.bf16.msra.mxu0 %v5550_v29 }
 0x7d9   :  { %5552 = vmatprep.subr.bf16.mxu0 %v5662_v39 }
 0x7dc   :  { %5554 = vmatpush3.bf16.msra.mxu0 %v5553_v15 }
 0x7dd   :  { %5555 = vmatprep.subr.bf16.mxu0 %v5662_v39 }
 0x7e0   :  { %5557 = vmatpush3.bf16.msra.mxu0 %v5556_v35 }
 0x7e1   :  { %5558 = vmatprep.subr.bf16.mxu0 %v5662_v39 }
 0x7e4   :  { %5560 = vmatpush3.bf16.msra.mxu0 %v5559_v42 }
 0x7e7   :  { %5047 = vmatmul.mubr.f32.vlgmr.msra.gmra.mrb[38].mxu0 %v7093_v38 }
 0x852   :  { %v3188_v20 = vpop.f32.mrb[56].mxu1 }
 0x853   :  { %v4838_v41 = vpop.f32.mrb[57].mxu1 }
 0x8ba   :  { %v3614_v22 = vpop.f32.mrb[38].mxu0 }
 0x8bb   :  { %v5561_v48 = vadd.f32 %v3614_v22, %v3188_v20  ;;  %v5048_v32 = vpop.f32.mrb[39].mxu0 }
 0x8bd   :  { %v3621_v47 = vrot.slane %v5561_v48, 4 }
 0x8bf   :  { %v3622_v17 = vadd.f32 %v5561_v48, %v3621_v47 }
 0x8c1   :  { %v3623_v23 = vrot.slane %v3622_v17, 2 }
 0x8c3   :  { %v3624_v54 = vadd.f32 %v3623_v23, %v3622_v17 }
 0x8c5   :  { %v3625_v34 = vrot.slane %v3624_v54, 1 }
 0x8c7   :  { %v3626_v37 = vadd.f32 %v3625_v34, %v3624_v54 }
 0x8c9   :  { %v3627_v28 = vmul.f32 0.125, %v3626_v37 }
 0x8cb   :  { %v3628_v44 = vsub.f32 %v5561_v48, %v3627_v28 }
 0x8cd   :  { %v3629_v33 = vmul.f32 %v3628_v44, %v3628_v44 }
 0x8cf   :  { %v3630_v43 = vrot.slane %v3629_v33, 4 }
 0x8d1   :  { %v3631_v31 = vadd.f32 %v3630_v43, %v3629_v33 }
 0x8d3   :  { %v3632_v39 = vrot.slane %v3631_v31, 2 }
 0x8d5   :  { %v3633_v46 = vadd.f32 %v3632_v39, %v3631_v31 }
 0x8d7   :  { %v3634_v49 = vrot.slane %v3633_v46, 1 }
 0x8d9   :  { %v3635_v38 = vadd.f32 %v3634_v49, %v3633_v46 }
 0x8db   :  { %v3636_v50 = vmul.f32 0.125, %v3635_v38 }
 0x8dd   :  { %v3637_v51 = vadd.f32 1e-05, %v3636_v50 }
 0x8df   :  { %5635 = vrsqrt.f32 %v3637_v51 }
 0x8e9   :  { %v5636_v55 = vpop.eup %5635 }
 0x8ea   :  { %v3639_v8 = vmul.f32 %v5636_v55, %v3619_v52 }
 0x8ec   :  { %v3640_v58 = vmul.f32 %v3639_v8, %v3627_v28  ;;  %v3646_v61 = vrot.slane %v3639_v8, %v5953_v57 }
 0x8ee   :  { %v3641_v27 = vsub.f32 %v3620_v56, %v3640_v58  ;;  %v3648_v53 = vmul.f32 %v5561_v48, %v3646_v61 }
 0x8f0   :  { %v3653_v59 = vrot.slane %v3641_v27, %v5953_v57 }
 0x8f2   :  { %v3655_v62 = vadd.f32 %v3653_v59, %v3648_v53 }
 0x8f4   :  { %v3656_v63 = vmax.f32 %v3655_v62, 0.0 }
 0x8f6   :  { %3657 = vst [vmem:[#allocation2] sm:$0xff] %v3656_v63 }
 0x8f7   :  { %5648 = shalt.err (!%p5645_p4)
}
 0x8f8   :  { %s5649_s26 = scalar_lea.hbm %s7396_s16, 128 }
 0x8f9   :  { %p5650_p5 = scmp.ne.s32.totalorder %s7396_s16, %s5649_s26  ;;  %p5653_p6 = scmp.lt.u32.totalorder %s5649_s26, %s7396_s16 }
 0x8fb   :  { %p5655_p7 = pnand %p5653_p6, %p5650_p5 }
 0x8fd   :  { %5658 = shalt.err (!%p5655_p7)
}
 0x8fe   :  { %3667 = dma.vmem_to_hbm [thread:$0]  %s3665_s3, 128, %s7396_s16, [#allocation3]  }
 0x8ff   :  { %5659 = dma.done.wait [#allocation3], 128  }
 0x900   :  { %5660 = vsyncadd [#allocation3], 4294967168 }
 0x901   :  { %3671 = vsyncpa [#allocation3], 1 }

</bundles_post_ra>
